<compile_context>
chip_gen: v7x
topology: tpu7x:2x2x1
jax: 0.10.0
libtpu: 0.0.40
codegen_flags: <defaults>
</compile_context>

<pallas_src>
import jax
import jax.numpy as jnp
from jax.experimental import pallas as pl
from jax.experimental.pallas import tpu as pltpu

BOTTLENECK = 512  # ClassBlock num_bottleneck


# ---------------------------------------------------------------------------
# Pallas kernels (fused Linear -> Dropout(identity, eval) -> Linear)
# ---------------------------------------------------------------------------
def _classblock_kernel(x_ref, w1_ref, b1_ref, w2_ref, b2_ref, o_ref):
    # x_ref : (bm, input_dim)        bf16
    # w1_ref: (input_dim, 512)       bf16
    # b1_ref: (1, 512)               f32
    # w2_ref: (512, classes_padded)  f32
    # b2_ref: (1, classes_padded)    f32
    # o_ref : (bm, classes_padded)   f32
    h = jnp.dot(x_ref[...], w1_ref[...], preferred_element_type=jnp.float32) + b1_ref[...]
    # TODO(synk): nn.Dropout is stochastic only in training; eval mode is identity.
    o_ref[...] = jnp.dot(h, w2_ref[...], preferred_element_type=jnp.float32) + b2_ref[...]


def _classblock_kernel_feat(x_ref, w1_ref, b1_ref, w2_ref, b2_ref, o_ref, f_ref):
    # Same as above, also emits the bottleneck feature f = add_block(x).
    h = jnp.dot(x_ref[...], w1_ref[...], preferred_element_type=jnp.float32) + b1_ref[...]
    f_ref[...] = h
    o_ref[...] = jnp.dot(h, w2_ref[...], preferred_element_type=jnp.float32) + b2_ref[...]


# ---------------------------------------------------------------------------
# Wrapper
# ---------------------------------------------------------------------------
def _round_up(x, m):
    return ((x + m - 1) // m) * m


def classblock_forward(x, params, *, return_feature=False):
    """Mirrors ClassBlock.forward(x). x: (B, input_dim) float32."""
    B, input_dim = x.shape
    bottleneck = params["w1"].shape[1]
    classes = params["w2"].shape[1]

    # --- layout plumbing (wrapper-side, no kernel math change) ---------------
    bm = min(128, _round_up(B, 8))          # batch tile, multiple of 8 sublanes
    Bp = _round_up(B, bm)                   # padded batch
    classes_p = _round_up(classes, 128)     # lane-dense output width

    x_p = jnp.pad(x.astype(jnp.bfloat16), ((0, Bp - B), (0, 0)))
    w1 = params["w1"].astype(jnp.bfloat16)                       # (input_dim, 512)
    b1 = params["b1"].astype(jnp.float32)                        # (1, 512)
    w2 = jnp.pad(params["w2"].astype(jnp.float32),
                 ((0, 0), (0, classes_p - classes)))             # (512, classes_p)
    b2 = jnp.pad(params["b2"].astype(jnp.float32),
                 ((0, 0), (0, classes_p - classes)))             # (1, classes_p)

    grid = (pl.cdiv(Bp, bm),)

    in_specs = [
        pl.BlockSpec((bm, input_dim), lambda i: (i, 0)),          # streamed batch tiles
        pl.BlockSpec((input_dim, bottleneck), lambda i: (0, 0)),  # resident weights
        pl.BlockSpec((1, bottleneck), lambda i: (0, 0)),
        pl.BlockSpec((bottleneck, classes_p), lambda i: (0, 0)),
        pl.BlockSpec((1, classes_p), lambda i: (0, 0)),
    ]
    out_spec_y = pl.BlockSpec((bm, classes_p), lambda i: (i, 0))

    compiler_params = pltpu.CompilerParams(
        dimension_semantics=("parallel",),        # batch axis -> both v7x TCs
        vmem_limit_bytes=32 * 1024 * 1024,        # fits v7x scoped budget
    )

    if return_feature:
        y_p, f_p = pl.pallas_call(
            _classblock_kernel_feat,
            out_shape=(
                jax.ShapeDtypeStruct((Bp, classes_p), jnp.float32),
                jax.ShapeDtypeStruct((Bp, bottleneck), jnp.float32),
            ),
            grid=grid,
            in_specs=in_specs,
            out_specs=(out_spec_y, pl.BlockSpec((bm, bottleneck), lambda i: (i, 0))),
            compiler_params=compiler_params,
        )(x_p, w1, b1, w2, b2)
        return y_p[:B, :classes], f_p[:B]

    y_p = pl.pallas_call(
        _classblock_kernel,
        out_shape=jax.ShapeDtypeStruct((Bp, classes_p), jnp.float32),
        grid=grid,
        in_specs=in_specs,
        out_specs=out_spec_y,
        compiler_params=compiler_params,
    )(x_p, w1, b1, w2, b2)
    return y_p[:B, :classes]


# ---------------------------------------------------------------------------
# Parameter construction (matching the PyTorch init schemes)
# ---------------------------------------------------------------------------
def make_params(key, input_dim, classes, num_bottleneck=BOTTLENECK):
    k1, k2 = jax.random.split(key, 2)

    # add_block Linear(input_dim, 512): kaiming_normal_(a=0, mode='fan_out')
    #   PyTorch weight is (out, in); fan_out = out_features -> std = sqrt(2/512). bias = 0.
    std_w1 = (2.0 / num_bottleneck) ** 0.5
    w1 = std_w1 * jax.random.normal(k1, (input_dim, num_bottleneck), jnp.float32)
    b1 = jnp.zeros((1, num_bottleneck), jnp.float32)

    # classifier Linear(512, classes): normal std=0.001; bias = 0.
    w2 = 0.001 * jax.random.normal(k2, (num_bottleneck, classes), jnp.float32)
    b2 = jnp.zeros((1, classes), jnp.float32)

    return dict(w1=w1, b1=b1, w2=w2, b2=b2)


# ---------------------------------------------------------------------------
# Main
# ---------------------------------------------------------------------------
if __name__ == "__main__":
    B = 2
    INPUT_DIM = 1792      # efficientnet_b4 pooled feature dim feeding ClassBlock
    CLASSES = 8

    key = jax.random.PRNGKey(0)
    kx, kp = jax.random.split(key)

    x = jax.random.normal(kx, (B, INPUT_DIM), jnp.float32)
    params = make_params(kp, INPUT_DIM, CLASSES)

    # return_feature=False path (default ClassBlock behavior)
    y = classblock_forward(x, params)
    jax.block_until_ready(y)
    assert y.shape == (B, CLASSES)

    # return_feature=True path
    y_f, f = classblock_forward(x, params, return_feature=True)
    jax.block_until_ready((y_f, f))
    assert y_f.shape == (B, CLASSES) and f.shape == (B, BOTTLENECK)

    # Loose numerical check vs a plain-JAX reference with the same bf16 cast on the
    # first matmul (kernel accumulates in f32).
    xb = x.astype(jnp.bfloat16).astype(jnp.float32)
    w1b = params["w1"].astype(jnp.bfloat16).astype(jnp.float32)
    h_ref = xb @ w1b + params["b1"]
    y_ref = h_ref @ params["w2"] + params["b2"]
    assert jnp.allclose(y, y_ref, rtol=5e-2, atol=5e-2)

    print("KERNEL_OK")
</pallas_src>

<mosaic_0001>
module attributes {stable_mosaic.version = 11 : i64} {
  func.func @_classblock_kernel(%arg0: i32, %arg1: memref<8x1792xbf16, #tpu.memory_space<vmem>>, %arg2: memref<1792x512xbf16, #tpu.memory_space<vmem>>, %arg3: memref<1x512xf32, #tpu.memory_space<vmem>>, %arg4: memref<512x128xf32, #tpu.memory_space<vmem>>, %arg5: memref<1x128xf32, #tpu.memory_space<vmem>>, %arg6: memref<8x128xf32, #tpu.memory_space<vmem>>) attributes {dimension_semantics = [#tpu.dimension_semantics<parallel>], iteration_bounds = array<i64: 1>, scalar_prefetch = 0 : i64, scratch_operands = 0 : i64, tpu.core_type = #tpu.core_type<tc>, window_params = [{transform_indices = @transform_0, window_bounds = array<i64: 8, 1792>}, {pipeline_mode = #tpu.pipeline_mode<synchronous>, transform_indices = @transform_1, window_bounds = array<i64: 1792, 512>}, {pipeline_mode = #tpu.pipeline_mode<synchronous>, transform_indices = @transform_2, window_bounds = array<i64: 1, 512>}, {pipeline_mode = #tpu.pipeline_mode<synchronous>, transform_indices = @transform_3, window_bounds = array<i64: 512, 128>}, {pipeline_mode = #tpu.pipeline_mode<synchronous>, transform_indices = @transform_4, window_bounds = array<i64: 1, 128>}, {transform_indices = @transform_5, window_bounds = array<i64: 8, 128>}]} {
    %c0 = arith.constant 0 : index
    %c0_0 = arith.constant 0 : index
    %0 = vector.load %arg1[%c0, %c0_0] : memref<8x1792xbf16, #tpu.memory_space<vmem>>, vector<8x1792xbf16>
    %c0_1 = arith.constant 0 : index
    %c0_2 = arith.constant 0 : index
    %1 = vector.load %arg2[%c0_1, %c0_2] : memref<1792x512xbf16, #tpu.memory_space<vmem>>, vector<1792x512xbf16>
    %cst = arith.constant dense<0.000000e+00> : vector<8x512xf32>
    %2 = tpu.matmul %0, %1, %cst {dimension_numbers = #tpu.dot_dimension_numbers<[1], [0], [0], [1], [0, 0, 1, 1], [], []>} : vector<8x1792xbf16>, vector<1792x512xbf16>, vector<8x512xf32> -> vector<8x512xf32>
    %c0_3 = arith.constant 0 : index
    %c0_4 = arith.constant 0 : index
    %3 = vector.load %arg3[%c0_3, %c0_4] : memref<1x512xf32, #tpu.memory_space<vmem>>, vector<1x512xf32>
    %4 = vector.broadcast %3 : vector<1x512xf32> to vector<8x512xf32>
    %5 = arith.addf %2, %4 : vector<8x512xf32>
    %c0_5 = arith.constant 0 : index
    %c0_6 = arith.constant 0 : index
    %6 = vector.load %arg4[%c0_5, %c0_6] : memref<512x128xf32, #tpu.memory_space<vmem>>, vector<512x128xf32>
    %cst_7 = arith.constant dense<0.000000e+00> : vector<8x128xf32>
    %7 = tpu.matmul %5, %6, %cst_7 {dimension_numbers = #tpu.dot_dimension_numbers<[1], [0], [0], [1], [0, 0, 1, 1], [], []>} : vector<8x512xf32>, vector<512x128xf32>, vector<8x128xf32> -> vector<8x128xf32>
    %c0_8 = arith.constant 0 : index
    %c0_9 = arith.constant 0 : index
    %8 = vector.load %arg5[%c0_8, %c0_9] : memref<1x128xf32, #tpu.memory_space<vmem>>, vector<1x128xf32>
    %9 = vector.broadcast %8 : vector<1x128xf32> to vector<8x128xf32>
    %10 = arith.addf %7, %9 : vector<8x128xf32>
    %c0_10 = arith.constant 0 : index
    %c0_11 = arith.constant 0 : index
    %11 = vector.load %arg6[%c0_10, %c0_11] : memref<8x128xf32, #tpu.memory_space<vmem>>, vector<8x128xf32>
    tpu.vector_store %arg6[%c0_10, %c0_11], %10 {strides = array<i32>} : memref<8x128xf32, #tpu.memory_space<vmem>>, vector<8x128xf32>,
    return
  }
  func.func @transform_0(%arg0: i32) -> (i32, i32) {
    %c0_i32 = arith.constant 0 : i32
    %c0_i32_0 = arith.constant 0 : i32
    return %arg0, %c0_i32 : i32, i32
  }
  func.func @transform_1(%arg0: i32) -> (i32, i32) {
    %c0_i32 = arith.constant 0 : i32
    %c0_i32_0 = arith.constant 0 : i32
    %c0_i32_1 = arith.constant 0 : i32
    return %c0_i32, %c0_i32_0 : i32, i32
  }
  func.func @transform_2(%arg0: i32) -> (i32, i32) {
    %c0_i32 = arith.constant 0 : i32
    %c0_i32_0 = arith.constant 0 : i32
    %c0_i32_1 = arith.constant 0 : i32
    return %c0_i32, %c0_i32_0 : i32, i32
  }
  func.func @transform_3(%arg0: i32) -> (i32, i32) {
    %c0_i32 = arith.constant 0 : i32
    %c0_i32_0 = arith.constant 0 : i32
    %c0_i32_1 = arith.constant 0 : i32
    return %c0_i32, %c0_i32_0 : i32, i32
  }
  func.func @transform_4(%arg0: i32) -> (i32, i32) {
    %c0_i32 = arith.constant 0 : i32
    %c0_i32_0 = arith.constant 0 : i32
    %c0_i32_1 = arith.constant 0 : i32
    return %c0_i32, %c0_i32_0 : i32, i32
  }
  func.func @transform_5(%arg0: i32) -> (i32, i32) {
    %c0_i32 = arith.constant 0 : i32
    %c0_i32_0 = arith.constant 0 : i32
    return %arg0, %c0_i32 : i32, i32
  }
}

</mosaic_0001>

<bundles_post_ra>
// kernel: tpu_custom_call.1
= control target key start
LH: loop header
LB: loop body
LE: loop exit
PB: predicated region body
PF: predicated region fallthrough
CT: control target
= control target key end

     0   :  { %10 = vsyncpa [#allocation3], 0  ;;  %s5285_s0 = inlined_call_operand.hbm [shape: bf16[8,1792], index: 0, kind: input, shape index: {}]   ;;  %s5286_s1 = inlined_call_operand.hbm [shape: bf16[1792,512], index: 1, kind: input, shape index: {}]   ;;  %s5287_s2 = inlined_call_operand.hbm [shape: f32[1,512], index: 2, kind: input, shape index: {}]   ;;  %s5288_s3 = inlined_call_operand.hbm [shape: f32[512,128], index: 3, kind: input, shape index: {}]   ;;  %s5289_s4 = inlined_call_operand.hbm [shape: f32[1,128], index: 4, kind: input, shape index: {}]   ;;  %s5290_s5 = inlined_call_operand.hbm [shape: f32[8,128], index: 5, kind: output, shape index: {}]  }
   0x1   :  { %11 = vsyncpa [#allocation6], 0 }
   0x2   :  { %12 = vsyncpa [#allocation9], 0 }
   0x3   :  { %13 = vsyncpa [#allocation4], 0  ;;  %s5137_s18 = smov [#allocation5]   ;;  %s4997_s22 = scalar_lea.hbm %s5286_s1, 57344 }
   0x4   :  { %s29_s19 = sshll.u32 %s5137_s18, 4  ;;  %p4998_p0 = scmp.ne.s32.totalorder %s5286_s1, %s4997_s22  ;;  %s30_s19 = int_to_ptr.vmem [resolvable:$true] %s29_s19 }
   0x5   :  { %p5001_p1 = scmp.lt.u32.totalorder %s4997_s22, %s5286_s1 }
   0x7   :  { %p5003_p2 = pnand %p5001_p1, %p4998_p0 }
   0x9   :  { %5006 = shalt.err (!%p5003_p2)
}
   0xa   :  { %s5007_s27 = scalar_lea.vmem %s30_s19, 57344  ;;  %p5012_p4 = scmp.lt.s32.totalorder %s30_s19, %s30_s19 }
   0xb   :  { %p5008_p3 = scmp.ne.s32.totalorder %s30_s19, %s5007_s27  ;;  %p5013_p5 = scmp.lt.s32.totalorder %s5007_s27, %s5007_s27 }
   0xd   :  { %p5014_p6 = por %p5013_p5, %p5012_p4 }
   0xf   :  { %p5015_p7 = pnand %p5014_p6, %p5008_p3 }
  0x11   :  { %5018 = shalt.err (!%p5015_p7)
}
  0x12   :  { %s5138_s28 = smov 256   ;;  %s5139_s29 = smov 16  }
  0x13   :  { %35 = dma.hbm_to_vmem [thread:$0]  %s5286_s1, 57344, %s30_s19, [#allocation6], %s5138_s28, %s5138_s28, %s5139_s29  }
  0x14   :  { %s5140_s7 = smov [#allocation8]   ;;  %s5019_s11 = scalar_lea.hbm %s5288_s3, 8192 }
  0x15   :  { %s51_s8 = sshll.u32 %s5140_s7, 4  ;;  %p5020_p8 = scmp.ne.s32.totalorder %s5288_s3, %s5019_s11  ;;  %s52_s8 = int_to_ptr.vmem [resolvable:$true] %s51_s8 }
  0x16   :  { %p5023_p9 = scmp.lt.u32.totalorder %s5019_s11, %s5288_s3 }
  0x18   :  { %p5025_p10 = pnand %p5023_p9, %p5020_p8 }
  0x1a   :  { %5028 = shalt.err (!%p5025_p10)
}
  0x1b   :  { %s5029_s16 = scalar_lea.vmem %s52_s8, 8192  ;;  %p5034_p12 = scmp.lt.s32.totalorder %s52_s8, %s52_s8 }
  0x1c   :  { %p5030_p11 = scmp.ne.s32.totalorder %s52_s8, %s5029_s16  ;;  %p5035_p13 = scmp.lt.s32.totalorder %s5029_s16, %s5029_s16 }
  0x1e   :  { %p5036_p0 = por %p5035_p13, %p5034_p12 }
  0x20   :  { %p5037_p1 = pnand %p5036_p0, %p5030_p11 }
  0x22   :  { %5040 = shalt.err (!%p5037_p1)
}
  0x23   :  { %s5141_s1 = smov 128   ;;  %s5142_s17 = smov 8  }
  0x24   :  { %57 = dma.hbm_to_vmem [thread:$0]  %s5288_s3, 8192, %s52_s8, [#allocation9], %s5141_s1, %s5141_s1, %s5142_s17  }
  0x25   :  { %s5143_s20 = smov [#allocation2]   ;;  %s5144_s22 = smov [#allocation7]  }
  0x26   :  { %s20_s21 = sshll.u32 %s5143_s20, 4  ;;  %s42_s23 = sshll.u32 %s5144_s22, 4  ;;  %s21_s21 = int_to_ptr.vmem [resolvable:$true] %s20_s21  ;;  %s43_s23 = int_to_ptr.vmem [resolvable:$true] %s42_s23 }
  0x27   :  { %s5041_s26 = scalar_lea.hbm %s5285_s0, 896 }
  0x28   :  { %p5042_p2 = scmp.ne.s32.totalorder %s5285_s0, %s5041_s26  ;;  %p5045_p3 = scmp.lt.u32.totalorder %s5041_s26, %s5285_s0 }
  0x2a   :  { %p5047_p4 = pnand %p5045_p3, %p5042_p2 }
  0x2c   :  { %5050 = shalt.err (!%p5047_p4)
}
  0x2d   :  { %s5051_s3 = scalar_lea.vmem %s21_s21, 896  ;;  %p5056_p6 = scmp.lt.s32.totalorder %s21_s21, %s21_s21 }
  0x2e   :  { %p5052_p5 = scmp.ne.s32.totalorder %s21_s21, %s5051_s3  ;;  %p5057_p7 = scmp.lt.s32.totalorder %s5051_s3, %s5051_s3 }
  0x30   :  { %p5058_p8 = por %p5057_p7, %p5056_p6 }
  0x32   :  { %p5059_p9 = pnand %p5058_p8, %p5052_p5 }
  0x34   :  { %5062 = shalt.err (!%p5059_p9)
}
  0x35   :  { %23 = dma.hbm_to_vmem [thread:$0]  %s5285_s0, 896, %s21_s21, [#allocation3]  }
  0x36   :  { %s5063_s10 = scalar_lea.hbm %s5287_s2, 64 }
  0x37   :  { %p5064_p10 = scmp.ne.s32.totalorder %s5287_s2, %s5063_s10  ;;  %p5067_p11 = scmp.lt.u32.totalorder %s5063_s10, %s5287_s2 }
  0x39   :  { %p5069_p12 = pnand %p5067_p11, %p5064_p10 }
  0x3b   :  { %5072 = shalt.err (!%p5069_p12)
}
  0x3c   :  { %s5073_s15 = scalar_lea.vmem %s43_s23, 64  ;;  %p5078_p0 = scmp.lt.s32.totalorder %s43_s23, %s43_s23 }
  0x3d   :  { %p5074_p13 = scmp.ne.s32.totalorder %s43_s23, %s5073_s15  ;;  %p5079_p1 = scmp.lt.s32.totalorder %s5073_s15, %s5073_s15 }
  0x3f   :  { %p5080_p2 = por %p5079_p1, %p5078_p0 }
  0x41   :  { %p5081_p3 = pnand %p5080_p2, %p5074_p13 }
  0x43   :  { %5084 = shalt.err (!%p5081_p3)
}
  0x44   :  { %45 = dma.hbm_to_vmem [thread:$0]  %s5287_s2, 64, %s43_s23, [#allocation6]  }
  0x45   :  { %s5145_s1 = smov [#allocation10]   ;;  %s5085_s20 = scalar_lea.hbm %s5289_s4, 16 }
  0x46   :  { %s64_s17 = sshll.u32 %s5145_s1, 4  ;;  %p5086_p4 = scmp.ne.s32.totalorder %s5289_s4, %s5085_s20  ;;  %s65_s17 = int_to_ptr.vmem [resolvable:$true] %s64_s17 }
  0x47   :  { %p5089_p5 = scmp.lt.u32.totalorder %s5085_s20, %s5289_s4 }
  0x49   :  { %p5091_p6 = pnand %p5089_p5, %p5086_p4 }
  0x4b   :  { %5094 = shalt.err (!%p5091_p6)
}
  0x4c   :  { %s5095_s26 = scalar_lea.vmem %s65_s17, 16  ;;  %s5099_s2 = scalar_lea.vmem %s65_s17, 32 }
  0x4d   :  { %p5096_p7 = scmp.ne.s32.totalorder %s65_s17, %s5095_s26  ;;  %p5100_p8 = scmp.lt.s32.totalorder %s65_s17, %s65_s17 }
  0x4e   :  { %p5101_p9 = scmp.lt.s32.totalorder %s5099_s2, %s5095_s26 }
  0x50   :  { %p5102_p10 = por %p5101_p9, %p5100_p8 }
  0x52   :  { %p5103_p11 = pnand %p5102_p10, %p5096_p7 }
  0x54   :  { %5106 = shalt.err (!%p5103_p11)
}
  0x55   :  { %67 = dma.hbm_to_vmem [thread:$0]  %s5289_s4, 16, %s65_s17, [#allocation9]  }
  0x56   :  { %5129 = dma.done.wait [#allocation3], 896  }
  0x57   :  { %5130 = vsyncadd [#allocation3], 4294966400 }
  0x58   :  { %5131 = dma.done.wait [#allocation6], 57408  }
  0x59   :  { %5132 = vsyncadd [#allocation6], 4294909888 }
  0x5a   :  { %5133 = dma.done.wait [#allocation9], 8208  }
  0x5b   :  { %5134 = vsyncadd [#allocation9], 4294959088  ;;  %v4311_v0 = vld [vmem:[#allocation5 + $0x4] ss:$16 sps:$4 sm:$0xff]   ;;  %v4313_v1 = vld [vmem:[#allocation5 + $0xc] ss:$16 sps:$4 sm:$0xff]  }
  0x5c   :  { %2849 = vmatprep.subr.bf16.mxu0 %v4311_v0  ;;  %v4315_v2 = vld [vmem:[#allocation5] ss:$16 sps:$4 sm:$0xff]   ;;  %v4316_v3 = vld [vmem:[#allocation5 + $0x8] ss:$16 sps:$4 sm:$0xff]   ;;  %3136 = vmatprep.subr.bf16.mxu1 %v4313_v1  ;;  %v4317_v4 = vld [vmem:[#allocation5 + $0x24] ss:$16 sps:$4 sm:$0xff]  }
  0x5d   :  { %2850 = vmatpush1.bf16.msra.mxu0 %v4315_v2  ;;  %3137 = vmatpush1.bf16.msra.mxu1 %v4316_v3  ;;  %v4319_v5 = vld [vmem:[#allocation5 + $0x2c] ss:$16 sps:$4 sm:$0xff]   ;;  %v4321_v6 = vld [vmem:[#allocation5 + $0x20] ss:$16 sps:$4 sm:$0xff]   ;;  %v4322_v7 = vld [vmem:[#allocation5 + $0x28] ss:$16 sps:$4 sm:$0xff]  }
  0x5e   :  { %2851 = vmatprep.subr.bf16.mxu0 %v4317_v4  ;;  %3138 = vmatprep.subr.bf16.mxu1 %v4319_v5  ;;  %v4323_v8 = vld [vmem:[#allocation5 + $0x44] ss:$16 sps:$4 sm:$0xff]   ;;  %v4325_v9 = vld [vmem:[#allocation5 + $0x4c] ss:$16 sps:$4 sm:$0xff]   ;;  %v4327_v10 = vld [vmem:[#allocation5 + $0x40] ss:$16 sps:$4 sm:$0xff]  }
  0x5f   :  { %v4328_v11 = vld [vmem:[#allocation5 + $0x48] ss:$16 sps:$4 sm:$0xff]   ;;  %v4329_v12 = vld [vmem:[#allocation5 + $0x64] ss:$16 sps:$4 sm:$0xff]   ;;  %v4331_v13 = vld [vmem:[#allocation5 + $0x6c] ss:$16 sps:$4 sm:$0xff]  }
  0x60   :  { %v4333_v14 = vld [vmem:[#allocation5 + $0x60] ss:$16 sps:$4 sm:$0xff]   ;;  %v4334_v15 = vld [vmem:[#allocation5 + $0x68] ss:$16 sps:$4 sm:$0xff]   ;;  %v4335_v16 = vld [vmem:[#allocation5 + $0x84] ss:$16 sps:$4 sm:$0xff]  }
  0x61   :  { %2852 = vmatpush1.bf16.msra.mxu0 %v4321_v6  ;;  %3139 = vmatpush1.bf16.msra.mxu1 %v4322_v7  ;;  %v4337_v17 = vld [vmem:[#allocation5 + $0x8c] ss:$16 sps:$4 sm:$0xff]   ;;  %v4339_v18 = vld [vmem:[#allocation5 + $0x80] ss:$16 sps:$4 sm:$0xff]   ;;  %v4340_v19 = vld [vmem:[#allocation5 + $0x88] ss:$16 sps:$4 sm:$0xff]  }
  0x62   :  { %2853 = vmatprep.subr.bf16.mxu0 %v4323_v8  ;;  %3140 = vmatprep.subr.bf16.mxu1 %v4325_v9  ;;  %v4341_v20 = vld [vmem:[#allocation5 + $0xa4] ss:$16 sps:$4 sm:$0xff]   ;;  %v4343_v21 = vld [vmem:[#allocation5 + $0xac] ss:$16 sps:$4 sm:$0xff]   ;;  %v4345_v22 = vld [vmem:[#allocation5 + $0xa0] ss:$16 sps:$4 sm:$0xff]  }
  0x63   :  { %v4346_v23 = vld [vmem:[#allocation5 + $0xa8] ss:$16 sps:$4 sm:$0xff]   ;;  %v4347_v24 = vld [vmem:[#allocation5 + $0xc4] ss:$16 sps:$4 sm:$0xff]   ;;  %v4349_v25 = vld [vmem:[#allocation5 + $0xcc] ss:$16 sps:$4 sm:$0xff]  }
  0x64   :  { %v4351_v26 = vld [vmem:[#allocation5 + $0xc0] ss:$16 sps:$4 sm:$0xff]   ;;  %v4352_v27 = vld [vmem:[#allocation5 + $0xc8] ss:$16 sps:$4 sm:$0xff]   ;;  %v4353_v28 = vld [vmem:[#allocation5 + $0xe4] ss:$16 sps:$4 sm:$0xff]  }
  0x65   :  { %2854 = vmatpush1.bf16.msra.mxu0 %v4327_v10  ;;  %3141 = vmatpush1.bf16.msra.mxu1 %v4328_v11  ;;  %v4355_v29 = vld [vmem:[#allocation5 + $0xec] ss:$16 sps:$4 sm:$0xff]   ;;  %v4357_v30 = vld [vmem:[#allocation5 + $0xe0] ss:$16 sps:$4 sm:$0xff]   ;;  %v4358_v31 = vld [vmem:[#allocation5 + $0xe8] ss:$16 sps:$4 sm:$0xff]  }
  0x66   :  { %2855 = vmatprep.subr.bf16.mxu0 %v4329_v12  ;;  %3142 = vmatprep.subr.bf16.mxu1 %v4331_v13  ;;  %v4359_v32 = vld [vmem:[#allocation5 + $0x104] ss:$16 sps:$4 sm:$0xff]   ;;  %v4361_v33 = vld [vmem:[#allocation5 + $0x10c] ss:$16 sps:$4 sm:$0xff]   ;;  %v4363_v34 = vld [vmem:[#allocation5 + $0x100] ss:$16 sps:$4 sm:$0xff]  }
  0x67   :  { %v4364_v35 = vld [vmem:[#allocation5 + $0x108] ss:$16 sps:$4 sm:$0xff]   ;;  %v4365_v36 = vld [vmem:[#allocation5 + $0x124] ss:$16 sps:$4 sm:$0xff]   ;;  %v4367_v37 = vld [vmem:[#allocation5 + $0x12c] ss:$16 sps:$4 sm:$0xff]  }
  0x68   :  { %v4369_v38 = vld [vmem:[#allocation5 + $0x120] ss:$16 sps:$4 sm:$0xff]   ;;  %v4370_v39 = vld [vmem:[#allocation5 + $0x128] ss:$16 sps:$4 sm:$0xff]   ;;  %v4371_v40 = vld [vmem:[#allocation5 + $0x144] ss:$16 sps:$4 sm:$0xff]  }
  0x69   :  { %2856 = vmatpush1.bf16.msra.mxu0 %v4333_v14  ;;  %3143 = vmatpush1.bf16.msra.mxu1 %v4334_v15  ;;  %v4373_v41 = vld [vmem:[#allocation5 + $0x14c] ss:$16 sps:$4 sm:$0xff]   ;;  %v4375_v42 = vld [vmem:[#allocation5 + $0x140] ss:$16 sps:$4 sm:$0xff]   ;;  %v4376_v43 = vld [vmem:[#allocation5 + $0x148] ss:$16 sps:$4 sm:$0xff]  }
  0x6a   :  { %2857 = vmatprep.subr.bf16.mxu0 %v4335_v16  ;;  %3144 = vmatprep.subr.bf16.mxu1 %v4337_v17  ;;  %v4377_v44 = vld [vmem:[#allocation5 + $0x164] ss:$16 sps:$4 sm:$0xff]   ;;  %v4379_v45 = vld [vmem:[#allocation5 + $0x16c] ss:$16 sps:$4 sm:$0xff]   ;;  %v4381_v47 = vld [vmem:[#allocation5 + $0x160] ss:$16 sps:$4 sm:$0xff]  }
  0x6b   :  { %v83_v46 = vld [vmem:[#allocation2] sm:$0xff]  ;;  %v4383_v50 = vld [vmem:[#allocation5 + $0x184] ss:$16 sps:$4 sm:$0xff]   ;;  %v4387_v52 = vld [vmem:[#allocation5 + $0x180] ss:$16 sps:$4 sm:$0xff]   ;;  %s5146_s4 = smov [#allocation11]  }
  0x6c   :  { %v3653_v48 = vcombine.high %v83_v46, %v83_v46  ;;  %v4382_v49 = vld [vmem:[#allocation5 + $0x168] ss:$16 sps:$4 sm:$0xff]   ;;  %v4385_v51 = vld [vmem:[#allocation5 + $0x18c] ss:$16 sps:$4 sm:$0xff]   ;;  %v4389_v54 = vld [vmem:[#allocation5 + $0x1a4] ss:$16 sps:$4 sm:$0xff]   ;;  %v3652_v4 = vcombine.low %v83_v46, %v83_v46 }
  0x6d   :  { %2858 = vmatpush1.bf16.msra.mxu0 %v4339_v18  ;;  %3145 = vmatpush1.bf16.msra.mxu1 %v4340_v19  ;;  %v4388_v53 = vld [vmem:[#allocation5 + $0x188] ss:$16 sps:$4 sm:$0xff]   ;;  %v4391_v55 = vld [vmem:[#allocation5 + $0x1ac] ss:$16 sps:$4 sm:$0xff]   ;;  %v4393_v56 = vld [vmem:[#allocation5 + $0x1a0] ss:$16 sps:$4 sm:$0xff]  }
  0x6e   :  { %2859 = vmatprep.subr.bf16.mxu0 %v4341_v20  ;;  %3146 = vmatprep.subr.bf16.mxu1 %v4343_v21  ;;  %v4394_v57 = vld [vmem:[#allocation5 + $0x1a8] ss:$16 sps:$4 sm:$0xff]   ;;  %v4395_v58 = vld [vmem:[#allocation5 + $0x1c4] ss:$16 sps:$4 sm:$0xff]   ;;  %v4397_v59 = vld [vmem:[#allocation5 + $0x1cc] ss:$16 sps:$4 sm:$0xff]  }
  0x6f   :  { %2881 = vmatprep.mubr.bf16.mxu0 %v3653_v48  ;;  %3168 = vmatprep.mubr.bf16.mxu1 %v3653_v48  ;;  %v4399_v60 = vld [vmem:[#allocation5 + $0x1c0] ss:$16 sps:$4 sm:$0xff]   ;;  %v4400_v61 = vld [vmem:[#allocation5 + $0x1c8] ss:$16 sps:$4 sm:$0xff]   ;;  %v4401_v62 = vld [vmem:[#allocation5 + $0x1e4] ss:$16 sps:$4 sm:$0xff]  }
  0x70   :  { %v4403_v63 = vld [vmem:[#allocation5 + $0x1ec] ss:$16 sps:$4 sm:$0xff]   ;;  %v4405_v0 = vld [vmem:[#allocation5 + $0x1e0] ss:$16 sps:$4 sm:$0xff]   ;;  %v4406_v1 = vld [vmem:[#allocation5 + $0x1e8] ss:$16 sps:$4 sm:$0xff]  }
  0x71   :  { %2860 = vmatpush1.bf16.msra.mxu0 %v4345_v22  ;;  %3147 = vmatpush1.bf16.msra.mxu1 %v4346_v23  ;;  %v4411_v2 = vld [vmem:[#allocation5 + $0x204] ss:$16 sps:$4 sm:$0xff]   ;;  %v4414_v3 = vld [vmem:[#allocation5 + $0x20c] ss:$16 sps:$4 sm:$0xff]   ;;  %v4409_v5 = vld [vmem:[#allocation5 + $0x200] ss:$16 sps:$4 sm:$0xff]  }
  0x72   :  { %2861 = vmatprep.subr.bf16.mxu0 %v4347_v24  ;;  %3148 = vmatprep.subr.bf16.mxu1 %v4349_v25  ;;  %v4412_v6 = vld [vmem:[#allocation5 + $0x208] ss:$16 sps:$4 sm:$0xff]   ;;  %v4417_v7 = vld [vmem:[#allocation5 + $0x224] ss:$16 sps:$4 sm:$0xff]   ;;  %v4420_v8 = vld [vmem:[#allocation5 + $0x22c] ss:$16 sps:$4 sm:$0xff]  }
  0x73   :  { %v4415_v9 = vld [vmem:[#allocation5 + $0x220] ss:$16 sps:$4 sm:$0xff]   ;;  %v4418_v10 = vld [vmem:[#allocation5 + $0x228] ss:$16 sps:$4 sm:$0xff]   ;;  %v4423_v11 = vld [vmem:[#allocation5 + $0x244] ss:$16 sps:$4 sm:$0xff]  }
  0x74   :  { %v4426_v12 = vld [vmem:[#allocation5 + $0x24c] ss:$16 sps:$4 sm:$0xff]   ;;  %v4421_v13 = vld [vmem:[#allocation5 + $0x240] ss:$16 sps:$4 sm:$0xff]   ;;  %v4424_v14 = vld [vmem:[#allocation5 + $0x248] ss:$16 sps:$4 sm:$0xff]  }
  0x75   :  { %2862 = vmatpush1.bf16.msra.mxu0 %v4351_v26  ;;  %3149 = vmatpush1.bf16.msra.mxu1 %v4352_v27  ;;  %v4429_v15 = vld [vmem:[#allocation5 + $0x264] ss:$16 sps:$4 sm:$0xff]   ;;  %v4432_v16 = vld [vmem:[#allocation5 + $0x26c] ss:$16 sps:$4 sm:$0xff]   ;;  %v4427_v17 = vld [vmem:[#allocation5 + $0x260] ss:$16 sps:$4 sm:$0xff]  }
  0x76   :  { %2863 = vmatprep.subr.bf16.mxu0 %v4353_v28  ;;  %3150 = vmatprep.subr.bf16.mxu1 %v4355_v29  ;;  %v4430_v18 = vld [vmem:[#allocation5 + $0x268] ss:$16 sps:$4 sm:$0xff]   ;;  %v4435_v19 = vld [vmem:[#allocation5 + $0x284] ss:$16 sps:$4 sm:$0xff]   ;;  %v4438_v20 = vld [vmem:[#allocation5 + $0x28c] ss:$16 sps:$4 sm:$0xff]  }
  0x77   :  { %v4433_v21 = vld [vmem:[#allocation5 + $0x280] ss:$16 sps:$4 sm:$0xff]   ;;  %v4436_v22 = vld [vmem:[#allocation5 + $0x288] ss:$16 sps:$4 sm:$0xff]   ;;  %v4441_v23 = vld [vmem:[#allocation5 + $0x2a4] ss:$16 sps:$4 sm:$0xff]  }
  0x78   :  { %v4444_v24 = vld [vmem:[#allocation5 + $0x2ac] ss:$16 sps:$4 sm:$0xff]   ;;  %v4439_v25 = vld [vmem:[#allocation5 + $0x2a0] ss:$16 sps:$4 sm:$0xff]   ;;  %v4442_v26 = vld [vmem:[#allocation5 + $0x2a8] ss:$16 sps:$4 sm:$0xff]  }
  0x79   :  { %2864 = vmatpush1.bf16.msra.mxu0 %v4357_v30  ;;  %3151 = vmatpush1.bf16.msra.mxu1 %v4358_v31  ;;  %v4447_v27 = vld [vmem:[#allocation5 + $0x2c4] ss:$16 sps:$4 sm:$0xff]   ;;  %v4450_v28 = vld [vmem:[#allocation5 + $0x2cc] ss:$16 sps:$4 sm:$0xff]   ;;  %v4445_v31 = vld [vmem:[#allocation5 + $0x2c0] ss:$16 sps:$4 sm:$0xff]  }
  0x7a   :  { %2865 = vmatprep.subr.bf16.mxu0 %v4359_v32  ;;  %3152 = vmatprep.subr.bf16.mxu1 %v4361_v33  ;;  %v5237_v29 = vld [vmem:[#allocation2 + $0x8] sm:$0xff]  ;;  %v4448_v32 = vld [vmem:[#allocation5 + $0x2c8] ss:$16 sps:$4 sm:$0xff]   ;;  %v4474_v46 = vld [vmem:[#allocation5 + $0x34c] ss:$16 sps:$4 sm:$0xff]   ;;  %s3641_s28 = sshll.u32 %s5146_s4, 4  ;;  %s3642_s28 = int_to_ptr.vmem [resolvable:$true] %s3641_s28 }
  0x7b   :  { %v3655_v30 = vcombine.high %v5237_v29, %v5237_v29  ;;  %v4453_v33 = vld [vmem:[#allocation5 + $0x2e4] ss:$16 sps:$4 sm:$0xff]   ;;  %v4472_v48 = vld [vmem:[#allocation5 + $0x348] ss:$16 sps:$4 sm:$0xff]   ;;  %s5107_s29 = scalar_lea.vmem %s3642_s28, 128  ;;  %p5112_p13 = scmp.lt.s32.totalorder %s3642_s28, %s3642_s28 }
  0x7c   :  { %p5108_p12 = scmp.ne.s32.totalorder %s3642_s28, %s5107_s29  ;;  %p5113_p0 = scmp.lt.s32.totalorder %s5107_s29, %s5107_s29 }
  0x7d   :  { %2866 = vmatpush1.bf16.msra.mxu0 %v4363_v34  ;;  %3153 = vmatpush1.bf16.msra.mxu1 %v4364_v35  ;;  %v4456_v34 = vld [vmem:[#allocation5 + $0x2ec] ss:$16 sps:$4 sm:$0xff]   ;;  %v4451_v35 = vld [vmem:[#allocation5 + $0x2e0] ss:$16 sps:$4 sm:$0xff]  }
  0x7e   :  { %2867 = vmatprep.subr.bf16.mxu0 %v4365_v36  ;;  %3154 = vmatprep.subr.bf16.mxu1 %v4367_v37  ;;  %v4454_v36 = vld [vmem:[#allocation5 + $0x2e8] ss:$16 sps:$4 sm:$0xff]   ;;  %v4459_v37 = vld [vmem:[#allocation5 + $0x304] ss:$16 sps:$4 sm:$0xff]   ;;  %p5114_p1 = por %p5113_p0, %p5112_p13 }
  0x80   :  { %p5115_p2 = pnand %p5114_p1, %p5108_p12 }
  0x81   :  { %2868 = vmatpush1.bf16.msra.mxu0 %v4369_v38  ;;  %3155 = vmatpush1.bf16.msra.mxu1 %v4370_v39  ;;  %v4462_v38 = vld [vmem:[#allocation5 + $0x30c] ss:$16 sps:$4 sm:$0xff]   ;;  %v4457_v39 = vld [vmem:[#allocation5 + $0x300] ss:$16 sps:$4 sm:$0xff]  }
  0x82   :  { %2869 = vmatprep.subr.bf16.mxu0 %v4371_v40  ;;  %3156 = vmatprep.subr.bf16.mxu1 %v4373_v41  ;;  %v4460_v40 = vld [vmem:[#allocation5 + $0x308] ss:$16 sps:$4 sm:$0xff]   ;;  %v4465_v41 = vld [vmem:[#allocation5 + $0x324] ss:$16 sps:$4 sm:$0xff]  }
  0x85   :  { %2870 = vmatpush1.bf16.msra.mxu0 %v4375_v42  ;;  %3157 = vmatpush1.bf16.msra.mxu1 %v4376_v43  ;;  %v4468_v42 = vld [vmem:[#allocation5 + $0x32c] ss:$16 sps:$4 sm:$0xff]   ;;  %v4463_v43 = vld [vmem:[#allocation5 + $0x320] ss:$16 sps:$4 sm:$0xff]  }
  0x86   :  { %2871 = vmatprep.subr.bf16.mxu0 %v4377_v44  ;;  %3158 = vmatprep.subr.bf16.mxu1 %v4379_v45  ;;  %v4466_v44 = vld [vmem:[#allocation5 + $0x328] ss:$16 sps:$4 sm:$0xff]   ;;  %v4471_v45 = vld [vmem:[#allocation5 + $0x344] ss:$16 sps:$4 sm:$0xff]  }
  0x89   :  { %2872 = vmatpush1.bf16.msra.mxu0 %v4381_v47  ;;  %3159 = vmatpush1.bf16.msra.mxu1 %v4382_v49  ;;  %v4469_v47 = vld [vmem:[#allocation5 + $0x340] ss:$16 sps:$4 sm:$0xff]   ;;  %v4477_v49 = vld [vmem:[#allocation5 + $0x364] ss:$16 sps:$4 sm:$0xff]  }
  0x8a   :  { %2873 = vmatprep.subr.bf16.mxu0 %v4383_v50  ;;  %3160 = vmatprep.subr.bf16.mxu1 %v4385_v51  ;;  %v4480_v50 = vld [vmem:[#allocation5 + $0x36c] ss:$16 sps:$4 sm:$0xff]   ;;  %v4475_v51 = vld [vmem:[#allocation5 + $0x360] ss:$16 sps:$4 sm:$0xff]  }
  0x8d   :  { %2874 = vmatpush1.bf16.msra.mxu0 %v4387_v52  ;;  %3161 = vmatpush1.bf16.msra.mxu1 %v4388_v53  ;;  %v4478_v52 = vld [vmem:[#allocation5 + $0x368] ss:$16 sps:$4 sm:$0xff]   ;;  %v4483_v53 = vld [vmem:[#allocation5 + $0x384] ss:$16 sps:$4 sm:$0xff]  }
  0x8e   :  { %2875 = vmatprep.subr.bf16.mxu0 %v4389_v54  ;;  %3162 = vmatprep.subr.bf16.mxu1 %v4391_v55  ;;  %v4486_v54 = vld [vmem:[#allocation5 + $0x38c] ss:$16 sps:$4 sm:$0xff]   ;;  %v4481_v55 = vld [vmem:[#allocation5 + $0x380] ss:$16 sps:$4 sm:$0xff]  }
  0x91   :  { %2876 = vmatpush1.bf16.msra.mxu0 %v4393_v56  ;;  %3163 = vmatpush1.bf16.msra.mxu1 %v4394_v57  ;;  %v4484_v56 = vld [vmem:[#allocation5 + $0x388] ss:$16 sps:$4 sm:$0xff]   ;;  %v4489_v57 = vld [vmem:[#allocation5 + $0x3a4] ss:$16 sps:$4 sm:$0xff]  }
  0x92   :  { %2877 = vmatprep.subr.bf16.mxu0 %v4395_v58  ;;  %3164 = vmatprep.subr.bf16.mxu1 %v4397_v59  ;;  %v4492_v58 = vld [vmem:[#allocation5 + $0x3ac] ss:$16 sps:$4 sm:$0xff]   ;;  %v4487_v59 = vld [vmem:[#allocation5 + $0x3a0] ss:$16 sps:$4 sm:$0xff]  }
  0x95   :  { %2878 = vmatpush1.bf16.msra.mxu0 %v4399_v60  ;;  %3165 = vmatpush1.bf16.msra.mxu1 %v4400_v61  ;;  %v4490_v60 = vld [vmem:[#allocation5 + $0x3a8] ss:$16 sps:$4 sm:$0xff]   ;;  %v4495_v61 = vld [vmem:[#allocation5 + $0x3c4] ss:$16 sps:$4 sm:$0xff]  }
  0x96   :  { %2879 = vmatprep.subr.bf16.mxu0 %v4401_v62  ;;  %3166 = vmatprep.subr.bf16.mxu1 %v4403_v63  ;;  %v4498_v62 = vld [vmem:[#allocation5 + $0x3cc] ss:$16 sps:$4 sm:$0xff]   ;;  %v4493_v63 = vld [vmem:[#allocation5 + $0x3c0] ss:$16 sps:$4 sm:$0xff]  }
  0x99   :  { %2880 = vmatpush1.bf16.msra.mxu0 %v4405_v0  ;;  %3167 = vmatpush1.bf16.msra.mxu1 %v4406_v1  ;;  %v4496_v0 = vld [vmem:[#allocation5 + $0x3c8] ss:$16 sps:$4 sm:$0xff]   ;;  %v4501_v1 = vld [vmem:[#allocation5 + $0x3e4] ss:$16 sps:$4 sm:$0xff]  }
  0x9a   :  { %2890 = vmatprep.subr.bf16.mxu0 %v4411_v2  ;;  %3177 = vmatprep.subr.bf16.mxu1 %v4414_v3  ;;  %v4504_v2 = vld [vmem:[#allocation5 + $0x3ec] ss:$16 sps:$4 sm:$0xff]   ;;  %v4499_v3 = vld [vmem:[#allocation5 + $0x3e0] ss:$16 sps:$4 sm:$0xff]  }
  0x9c   :  { %2882 = vmatmul.mubr.bf16.vlgmr.msra.gmra.mrb[0].mxu0 %v3652_v4  ;;  %3169 = vmatmul.mubr.bf16.vlgmr.msra.gmra.mrb[0].mxu1 %v3652_v4  ;;  %v4502_v4 = vld [vmem:[#allocation5 + $0x3e8] ss:$16 sps:$4 sm:$0xff]  }
  0x9d   :  { %2891 = vmatpush1.bf16.msra.mxu0 %v4409_v5  ;;  %3178 = vmatpush1.bf16.msra.mxu1 %v4412_v6  ;;  %v4509_v5 = vld [vmem:[#allocation5 + $0x404] ss:$16 sps:$4 sm:$0xff]   ;;  %v4512_v6 = vld [vmem:[#allocation5 + $0x40c] ss:$16 sps:$4 sm:$0xff]  }
  0x9e   :  { %2892 = vmatprep.subr.bf16.mxu0 %v4417_v7  ;;  %3179 = vmatprep.subr.bf16.mxu1 %v4420_v8  ;;  %v3654_v7 = vcombine.low %v5237_v29, %v5237_v29  ;;  %v4507_v8 = vld [vmem:[#allocation5 + $0x400] ss:$16 sps:$4 sm:$0xff]   ;;  %v4542_v29 = vld [vmem:[#allocation5 + $0x4ac] ss:$16 sps:$4 sm:$0xff]  }
  0x9f   :  { %2922 = vmatprep.mubr.bf16.mxu0 %v3655_v30  ;;  %3209 = vmatprep.mubr.bf16.mxu1 %v3655_v30  ;;  %v4537_v30 = vld [vmem:[#allocation5 + $0x4a0] ss:$16 sps:$4 sm:$0xff]  }
  0xa1   :  { %2893 = vmatpush1.bf16.msra.mxu0 %v4415_v9  ;;  %3180 = vmatpush1.bf16.msra.mxu1 %v4418_v10  ;;  %v4510_v9 = vld [vmem:[#allocation5 + $0x408] ss:$16 sps:$4 sm:$0xff]   ;;  %v4515_v10 = vld [vmem:[#allocation5 + $0x424] ss:$16 sps:$4 sm:$0xff]  }
  0xa2   :  { %2894 = vmatprep.subr.bf16.mxu0 %v4423_v11  ;;  %3181 = vmatprep.subr.bf16.mxu1 %v4426_v12  ;;  %v5243_v11 = vld [vmem:[#allocation2 + $0x10] sm:$0xff] }
  0xa3   :  { %v4518_v12 = vld [vmem:[#allocation5 + $0x42c] ss:$16 sps:$4 sm:$0xff]  }
  0xa5   :  { %2895 = vmatpush1.bf16.msra.mxu0 %v4421_v13  ;;  %3182 = vmatpush1.bf16.msra.mxu1 %v4424_v14  ;;  %v3657_v13 = vcombine.high %v5243_v11, %v5243_v11  ;;  %v4513_v14 = vld [vmem:[#allocation5 + $0x420] ss:$16 sps:$4 sm:$0xff]  }
  0xa6   :  { %2896 = vmatprep.subr.bf16.mxu0 %v4429_v15  ;;  %3183 = vmatprep.subr.bf16.mxu1 %v4432_v16  ;;  %v4516_v15 = vld [vmem:[#allocation5 + $0x428] ss:$16 sps:$4 sm:$0xff]   ;;  %v4521_v16 = vld [vmem:[#allocation5 + $0x444] ss:$16 sps:$4 sm:$0xff]  }
  0xa9   :  { %2897 = vmatpush1.bf16.msra.mxu0 %v4427_v17  ;;  %3184 = vmatpush1.bf16.msra.mxu1 %v4430_v18  ;;  %v4524_v17 = vld [vmem:[#allocation5 + $0x44c] ss:$16 sps:$4 sm:$0xff]   ;;  %v4519_v18 = vld [vmem:[#allocation5 + $0x440] ss:$16 sps:$4 sm:$0xff]  }
  0xaa   :  { %2898 = vmatprep.subr.bf16.mxu0 %v4435_v19  ;;  %3185 = vmatprep.subr.bf16.mxu1 %v4438_v20  ;;  %v4522_v19 = vld [vmem:[#allocation5 + $0x448] ss:$16 sps:$4 sm:$0xff]   ;;  %v4527_v20 = vld [vmem:[#allocation5 + $0x464] ss:$16 sps:$4 sm:$0xff]  }
  0xad   :  { %2899 = vmatpush1.bf16.msra.mxu0 %v4433_v21  ;;  %3186 = vmatpush1.bf16.msra.mxu1 %v4436_v22  ;;  %v4530_v21 = vld [vmem:[#allocation5 + $0x46c] ss:$16 sps:$4 sm:$0xff]   ;;  %v4525_v22 = vld [vmem:[#allocation5 + $0x460] ss:$16 sps:$4 sm:$0xff]  }
  0xae   :  { %2900 = vmatprep.subr.bf16.mxu0 %v4441_v23  ;;  %3187 = vmatprep.subr.bf16.mxu1 %v4444_v24  ;;  %v4528_v23 = vld [vmem:[#allocation5 + $0x468] ss:$16 sps:$4 sm:$0xff]   ;;  %v4533_v24 = vld [vmem:[#allocation5 + $0x484] ss:$16 sps:$4 sm:$0xff]  }
  0xb1   :  { %2901 = vmatpush1.bf16.msra.mxu0 %v4439_v25  ;;  %3188 = vmatpush1.bf16.msra.mxu1 %v4442_v26  ;;  %v4536_v25 = vld [vmem:[#allocation5 + $0x48c] ss:$16 sps:$4 sm:$0xff]   ;;  %v4531_v26 = vld [vmem:[#allocation5 + $0x480] ss:$16 sps:$4 sm:$0xff]  }
  0xb2   :  { %2902 = vmatprep.subr.bf16.mxu0 %v4447_v27  ;;  %3189 = vmatprep.subr.bf16.mxu1 %v4450_v28  ;;  %v4534_v27 = vld [vmem:[#allocation5 + $0x488] ss:$16 sps:$4 sm:$0xff]   ;;  %v4539_v28 = vld [vmem:[#allocation5 + $0x4a4] ss:$16 sps:$4 sm:$0xff]  }
  0xb5   :  { %2903 = vmatpush1.bf16.msra.mxu0 %v4445_v31  ;;  %3190 = vmatpush1.bf16.msra.mxu1 %v4448_v32  ;;  %v4540_v31 = vld [vmem:[#allocation5 + $0x4a8] ss:$16 sps:$4 sm:$0xff]   ;;  %v4545_v32 = vld [vmem:[#allocation5 + $0x4c4] ss:$16 sps:$4 sm:$0xff]  }
  0xb6   :  { %2904 = vmatprep.subr.bf16.mxu0 %v4453_v33  ;;  %3191 = vmatprep.subr.bf16.mxu1 %v4456_v34  ;;  %v4548_v33 = vld [vmem:[#allocation5 + $0x4cc] ss:$16 sps:$4 sm:$0xff]   ;;  %v4543_v34 = vld [vmem:[#allocation5 + $0x4c0] ss:$16 sps:$4 sm:$0xff]  }
  0xb9   :  { %2905 = vmatpush1.bf16.msra.mxu0 %v4451_v35  ;;  %3192 = vmatpush1.bf16.msra.mxu1 %v4454_v36  ;;  %v4546_v35 = vld [vmem:[#allocation5 + $0x4c8] ss:$16 sps:$4 sm:$0xff]   ;;  %v4551_v36 = vld [vmem:[#allocation5 + $0x4e4] ss:$16 sps:$4 sm:$0xff]  }
  0xba   :  { %2906 = vmatprep.subr.bf16.mxu0 %v4459_v37  ;;  %3193 = vmatprep.subr.bf16.mxu1 %v4462_v38  ;;  %v4554_v37 = vld [vmem:[#allocation5 + $0x4ec] ss:$16 sps:$4 sm:$0xff]   ;;  %v4549_v38 = vld [vmem:[#allocation5 + $0x4e0] ss:$16 sps:$4 sm:$0xff]  }
  0xbd   :  { %2907 = vmatpush1.bf16.msra.mxu0 %v4457_v39  ;;  %3194 = vmatpush1.bf16.msra.mxu1 %v4460_v40  ;;  %v4552_v39 = vld [vmem:[#allocation5 + $0x4e8] ss:$16 sps:$4 sm:$0xff]   ;;  %v4557_v40 = vld [vmem:[#allocation5 + $0x504] ss:$16 sps:$4 sm:$0xff]  }
  0xbe   :  { %2908 = vmatprep.subr.bf16.mxu0 %v4465_v41  ;;  %3195 = vmatprep.subr.bf16.mxu1 %v4468_v42  ;;  %v4560_v41 = vld [vmem:[#allocation5 + $0x50c] ss:$16 sps:$4 sm:$0xff]   ;;  %v4555_v42 = vld [vmem:[#allocation5 + $0x500] ss:$16 sps:$4 sm:$0xff]  }
  0xc1   :  { %2909 = vmatpush1.bf16.msra.mxu0 %v4463_v43  ;;  %3196 = vmatpush1.bf16.msra.mxu1 %v4466_v44  ;;  %v4558_v43 = vld [vmem:[#allocation5 + $0x508] ss:$16 sps:$4 sm:$0xff]   ;;  %v4563_v44 = vld [vmem:[#allocation5 + $0x524] ss:$16 sps:$4 sm:$0xff]  }
  0xc2   :  { %2910 = vmatprep.subr.bf16.mxu0 %v4471_v45  ;;  %3197 = vmatprep.subr.bf16.mxu1 %v4474_v46  ;;  %v4566_v45 = vld [vmem:[#allocation5 + $0x52c] ss:$16 sps:$4 sm:$0xff]   ;;  %v4561_v46 = vld [vmem:[#allocation5 + $0x520] ss:$16 sps:$4 sm:$0xff]  }
  0xc5   :  { %2911 = vmatpush1.bf16.msra.mxu0 %v4469_v47  ;;  %3198 = vmatpush1.bf16.msra.mxu1 %v4472_v48  ;;  %v4564_v47 = vld [vmem:[#allocation5 + $0x528] ss:$16 sps:$4 sm:$0xff]   ;;  %v4569_v48 = vld [vmem:[#allocation5 + $0x544] ss:$16 sps:$4 sm:$0xff]  }
  0xc6   :  { %2912 = vmatprep.subr.bf16.mxu0 %v4477_v49  ;;  %3199 = vmatprep.subr.bf16.mxu1 %v4480_v50  ;;  %v4572_v49 = vld [vmem:[#allocation5 + $0x54c] ss:$16 sps:$4 sm:$0xff]   ;;  %v4567_v50 = vld [vmem:[#allocation5 + $0x540] ss:$16 sps:$4 sm:$0xff]  }
  0xc9   :  { %2913 = vmatpush1.bf16.msra.mxu0 %v4475_v51  ;;  %3200 = vmatpush1.bf16.msra.mxu1 %v4478_v52  ;;  %v4570_v51 = vld [vmem:[#allocation5 + $0x548] ss:$16 sps:$4 sm:$0xff]   ;;  %v4575_v52 = vld [vmem:[#allocation5 + $0x564] ss:$16 sps:$4 sm:$0xff]  }
  0xca   :  { %2914 = vmatprep.subr.bf16.mxu0 %v4483_v53  ;;  %3201 = vmatprep.subr.bf16.mxu1 %v4486_v54  ;;  %v4578_v53 = vld [vmem:[#allocation5 + $0x56c] ss:$16 sps:$4 sm:$0xff]   ;;  %v4573_v54 = vld [vmem:[#allocation5 + $0x560] ss:$16 sps:$4 sm:$0xff]  }
  0xcd   :  { %2915 = vmatpush1.bf16.msra.mxu0 %v4481_v55  ;;  %3202 = vmatpush1.bf16.msra.mxu1 %v4484_v56  ;;  %v4576_v55 = vld [vmem:[#allocation5 + $0x568] ss:$16 sps:$4 sm:$0xff]   ;;  %v4581_v56 = vld [vmem:[#allocation5 + $0x584] ss:$16 sps:$4 sm:$0xff]  }
  0xce   :  { %2916 = vmatprep.subr.bf16.mxu0 %v4489_v57  ;;  %3203 = vmatprep.subr.bf16.mxu1 %v4492_v58  ;;  %v4584_v57 = vld [vmem:[#allocation5 + $0x58c] ss:$16 sps:$4 sm:$0xff]   ;;  %v4579_v58 = vld [vmem:[#allocation5 + $0x580] ss:$16 sps:$4 sm:$0xff]  }
  0xd1   :  { %2917 = vmatpush1.bf16.msra.mxu0 %v4487_v59  ;;  %3204 = vmatpush1.bf16.msra.mxu1 %v4490_v60  ;;  %v4582_v59 = vld [vmem:[#allocation5 + $0x588] ss:$16 sps:$4 sm:$0xff]   ;;  %v4587_v60 = vld [vmem:[#allocation5 + $0x5a4] ss:$16 sps:$4 sm:$0xff]  }
  0xd2   :  { %2918 = vmatprep.subr.bf16.mxu0 %v4495_v61  ;;  %3205 = vmatprep.subr.bf16.mxu1 %v4498_v62  ;;  %v4590_v61 = vld [vmem:[#allocation5 + $0x5ac] ss:$16 sps:$4 sm:$0xff]   ;;  %v4585_v62 = vld [vmem:[#allocation5 + $0x5a0] ss:$16 sps:$4 sm:$0xff]  }
  0xd5   :  { %2919 = vmatpush1.bf16.msra.mxu0 %v4493_v63  ;;  %3206 = vmatpush1.bf16.msra.mxu1 %v4496_v0  ;;  %v4588_v63 = vld [vmem:[#allocation5 + $0x5a8] ss:$16 sps:$4 sm:$0xff]   ;;  %v4593_v0 = vld [vmem:[#allocation5 + $0x5c4] ss:$16 sps:$4 sm:$0xff]  }
  0xd6   :  { %2920 = vmatprep.subr.bf16.mxu0 %v4501_v1  ;;  %3207 = vmatprep.subr.bf16.mxu1 %v4504_v2  ;;  %v4596_v1 = vld [vmem:[#allocation5 + $0x5cc] ss:$16 sps:$4 sm:$0xff]   ;;  %v4591_v2 = vld [vmem:[#allocation5 + $0x5c0] ss:$16 sps:$4 sm:$0xff]  }
  0xd9   :  { %2921 = vmatpush1.bf16.msra.mxu0 %v4499_v3  ;;  %3208 = vmatpush1.bf16.msra.mxu1 %v4502_v4  ;;  %v4594_v3 = vld [vmem:[#allocation5 + $0x5c8] ss:$16 sps:$4 sm:$0xff]   ;;  %v4599_v4 = vld [vmem:[#allocation5 + $0x5e4] ss:$16 sps:$4 sm:$0xff]  }
  0xda   :  { %2931 = vmatprep.subr.bf16.mxu0 %v4509_v5  ;;  %3218 = vmatprep.subr.bf16.mxu1 %v4512_v6  ;;  %v4602_v5 = vld [vmem:[#allocation5 + $0x5ec] ss:$16 sps:$4 sm:$0xff]   ;;  %v4597_v6 = vld [vmem:[#allocation5 + $0x5e0] ss:$16 sps:$4 sm:$0xff]  }
  0xdc   :  { %2923 = vmatmul.mubr.bf16.vlgmr.msra.gmra.mrb[0].mxu0 %v3654_v7  ;;  %3210 = vmatmul.mubr.bf16.vlgmr.msra.gmra.mrb[0].mxu1 %v3654_v7  ;;  %v4600_v7 = vld [vmem:[#allocation5 + $0x5e8] ss:$16 sps:$4 sm:$0xff]  }
  0xdd   :  { %2932 = vmatpush1.bf16.msra.mxu0 %v4507_v8  ;;  %3219 = vmatpush1.bf16.msra.mxu1 %v4510_v9  ;;  %v4607_v8 = vld [vmem:[#allocation5 + $0x604] ss:$16 sps:$4 sm:$0xff]   ;;  %v4610_v9 = vld [vmem:[#allocation5 + $0x60c] ss:$16 sps:$4 sm:$0xff]  }
  0xde   :  { %2933 = vmatprep.subr.bf16.mxu0 %v4515_v10  ;;  %3220 = vmatprep.subr.bf16.mxu1 %v4518_v12  ;;  %v4605_v10 = vld [vmem:[#allocation5 + $0x600] ss:$16 sps:$4 sm:$0xff]   ;;  %v3656_v12 = vcombine.low %v5243_v11, %v5243_v11  ;;  %v4622_v11 = vld [vmem:[#allocation5 + $0x64c] ss:$16 sps:$4 sm:$0xff]  }
  0xdf   :  { %2963 = vmatprep.mubr.bf16.mxu0 %v3657_v13  ;;  %3250 = vmatprep.mubr.bf16.mxu1 %v3657_v13  ;;  %v4608_v13 = vld [vmem:[#allocation5 + $0x608] ss:$16 sps:$4 sm:$0xff]  }
  0xe1   :  { %2934 = vmatpush1.bf16.msra.mxu0 %v4513_v14  ;;  %3221 = vmatpush1.bf16.msra.mxu1 %v4516_v15  ;;  %v5249_v14 = vld [vmem:[#allocation2 + $0x18] sm:$0xff] }
  0xe2   :  { %2935 = vmatprep.subr.bf16.mxu0 %v4521_v16  ;;  %3222 = vmatprep.subr.bf16.mxu1 %v4524_v17  ;;  %v4613_v15 = vld [vmem:[#allocation5 + $0x624] ss:$16 sps:$4 sm:$0xff]   ;;  %v4616_v16 = vld [vmem:[#allocation5 + $0x62c] ss:$16 sps:$4 sm:$0xff]   ;;  %v3659_v17 = vcombine.high %v5249_v14, %v5249_v14 }
  0xe5   :  { %2936 = vmatpush1.bf16.msra.mxu0 %v4519_v18  ;;  %3223 = vmatpush1.bf16.msra.mxu1 %v4522_v19  ;;  %v4611_v18 = vld [vmem:[#allocation5 + $0x620] ss:$16 sps:$4 sm:$0xff]   ;;  %v4614_v19 = vld [vmem:[#allocation5 + $0x628] ss:$16 sps:$4 sm:$0xff]  }
  0xe6   :  { %2937 = vmatprep.subr.bf16.mxu0 %v4527_v20  ;;  %3224 = vmatprep.subr.bf16.mxu1 %v4530_v21  ;;  %v4619_v20 = vld [vmem:[#allocation5 + $0x644] ss:$16 sps:$4 sm:$0xff]   ;;  %v4617_v21 = vld [vmem:[#allocation5 + $0x640] ss:$16 sps:$4 sm:$0xff]  }
  0xe9   :  { %2938 = vmatpush1.bf16.msra.mxu0 %v4525_v22  ;;  %3225 = vmatpush1.bf16.msra.mxu1 %v4528_v23  ;;  %v4620_v22 = vld [vmem:[#allocation5 + $0x648] ss:$16 sps:$4 sm:$0xff]   ;;  %v4625_v23 = vld [vmem:[#allocation5 + $0x664] ss:$16 sps:$4 sm:$0xff]  }
  0xea   :  { %2939 = vmatprep.subr.bf16.mxu0 %v4533_v24  ;;  %3226 = vmatprep.subr.bf16.mxu1 %v4536_v25  ;;  %v4628_v24 = vld [vmem:[#allocation5 + $0x66c] ss:$16 sps:$4 sm:$0xff]   ;;  %v4623_v25 = vld [vmem:[#allocation5 + $0x660] ss:$16 sps:$4 sm:$0xff]  }
  0xed   :  { %2940 = vmatpush1.bf16.msra.mxu0 %v4531_v26  ;;  %3227 = vmatpush1.bf16.msra.mxu1 %v4534_v27  ;;  %v4626_v26 = vld [vmem:[#allocation5 + $0x668] ss:$16 sps:$4 sm:$0xff]   ;;  %v4631_v27 = vld [vmem:[#allocation5 + $0x684] ss:$16 sps:$4 sm:$0xff]  }
  0xee   :  { %2941 = vmatprep.subr.bf16.mxu0 %v4539_v28  ;;  %3228 = vmatprep.subr.bf16.mxu1 %v4542_v29  ;;  %v4634_v28 = vld [vmem:[#allocation5 + $0x68c] ss:$16 sps:$4 sm:$0xff]   ;;  %v4629_v29 = vld [vmem:[#allocation5 + $0x680] ss:$16 sps:$4 sm:$0xff]  }
  0xf1   :  { %2942 = vmatpush1.bf16.msra.mxu0 %v4537_v30  ;;  %3229 = vmatpush1.bf16.msra.mxu1 %v4540_v31  ;;  %v4632_v30 = vld [vmem:[#allocation5 + $0x688] ss:$16 sps:$4 sm:$0xff]   ;;  %v4637_v31 = vld [vmem:[#allocation5 + $0x6a4] ss:$16 sps:$4 sm:$0xff]  }
  0xf2   :  { %2943 = vmatprep.subr.bf16.mxu0 %v4545_v32  ;;  %3230 = vmatprep.subr.bf16.mxu1 %v4548_v33  ;;  %v4640_v32 = vld [vmem:[#allocation5 + $0x6ac] ss:$16 sps:$4 sm:$0xff]   ;;  %v4635_v33 = vld [vmem:[#allocation5 + $0x6a0] ss:$16 sps:$4 sm:$0xff]  }
  0xf5   :  { %2944 = vmatpush1.bf16.msra.mxu0 %v4543_v34  ;;  %3231 = vmatpush1.bf16.msra.mxu1 %v4546_v35  ;;  %v4638_v34 = vld [vmem:[#allocation5 + $0x6a8] ss:$16 sps:$4 sm:$0xff]   ;;  %v4643_v35 = vld [vmem:[#allocation5 + $0x6c4] ss:$16 sps:$4 sm:$0xff]  }
  0xf6   :  { %2945 = vmatprep.subr.bf16.mxu0 %v4551_v36  ;;  %3232 = vmatprep.subr.bf16.mxu1 %v4554_v37  ;;  %v4646_v36 = vld [vmem:[#allocation5 + $0x6cc] ss:$16 sps:$4 sm:$0xff]   ;;  %v4641_v37 = vld [vmem:[#allocation5 + $0x6c0] ss:$16 sps:$4 sm:$0xff]  }
  0xf9   :  { %2946 = vmatpush1.bf16.msra.mxu0 %v4549_v38  ;;  %3233 = vmatpush1.bf16.msra.mxu1 %v4552_v39  ;;  %v4644_v38 = vld [vmem:[#allocation5 + $0x6c8] ss:$16 sps:$4 sm:$0xff]   ;;  %v4649_v39 = vld [vmem:[#allocation5 + $0x6e4] ss:$16 sps:$4 sm:$0xff]  }
  0xfa   :  { %2947 = vmatprep.subr.bf16.mxu0 %v4557_v40  ;;  %3234 = vmatprep.subr.bf16.mxu1 %v4560_v41  ;;  %v4652_v40 = vld [vmem:[#allocation5 + $0x6ec] ss:$16 sps:$4 sm:$0xff]   ;;  %v4647_v41 = vld [vmem:[#allocation5 + $0x6e0] ss:$16 sps:$4 sm:$0xff]  }
  0xfd   :  { %2948 = vmatpush1.bf16.msra.mxu0 %v4555_v42  ;;  %3235 = vmatpush1.bf16.msra.mxu1 %v4558_v43  ;;  %v4650_v42 = vld [vmem:[#allocation5 + $0x6e8] ss:$16 sps:$4 sm:$0xff]   ;;  %v4655_v43 = vld [vmem:[#allocation5 + $0x704] ss:$16 sps:$4 sm:$0xff]  }
  0xfe   :  { %2949 = vmatprep.subr.bf16.mxu0 %v4563_v44  ;;  %3236 = vmatprep.subr.bf16.mxu1 %v4566_v45  ;;  %v4658_v44 = vld [vmem:[#allocation5 + $0x70c] ss:$16 sps:$4 sm:$0xff]   ;;  %v4653_v45 = vld [vmem:[#allocation5 + $0x700] ss:$16 sps:$4 sm:$0xff]  }
 0x101   :  { %2950 = vmatpush1.bf16.msra.mxu0 %v4561_v46  ;;  %3237 = vmatpush1.bf16.msra.mxu1 %v4564_v47  ;;  %v4656_v46 = vld [vmem:[#allocation5 + $0x708] ss:$16 sps:$4 sm:$0xff]   ;;  %v4661_v47 = vld [vmem:[#allocation5 + $0x724] ss:$16 sps:$4 sm:$0xff]  }
 0x102   :  { %2951 = vmatprep.subr.bf16.mxu0 %v4569_v48  ;;  %3238 = vmatprep.subr.bf16.mxu1 %v4572_v49  ;;  %v4664_v48 = vld [vmem:[#allocation5 + $0x72c] ss:$16 sps:$4 sm:$0xff]   ;;  %v4659_v49 = vld [vmem:[#allocation5 + $0x720] ss:$16 sps:$4 sm:$0xff]  }
 0x105   :  { %2952 = vmatpush1.bf16.msra.mxu0 %v4567_v50  ;;  %3239 = vmatpush1.bf16.msra.mxu1 %v4570_v51  ;;  %v4662_v50 = vld [vmem:[#allocation5 + $0x728] ss:$16 sps:$4 sm:$0xff]   ;;  %v4667_v51 = vld [vmem:[#allocation5 + $0x744] ss:$16 sps:$4 sm:$0xff]  }
 0x106   :  { %2953 = vmatprep.subr.bf16.mxu0 %v4575_v52  ;;  %3240 = vmatprep.subr.bf16.mxu1 %v4578_v53  ;;  %v4670_v52 = vld [vmem:[#allocation5 + $0x74c] ss:$16 sps:$4 sm:$0xff]   ;;  %v4665_v53 = vld [vmem:[#allocation5 + $0x740] ss:$16 sps:$4 sm:$0xff]  }
 0x109   :  { %2954 = vmatpush1.bf16.msra.mxu0 %v4573_v54  ;;  %3241 = vmatpush1.bf16.msra.mxu1 %v4576_v55  ;;  %v4668_v54 = vld [vmem:[#allocation5 + $0x748] ss:$16 sps:$4 sm:$0xff]   ;;  %v4673_v55 = vld [vmem:[#allocation5 + $0x764] ss:$16 sps:$4 sm:$0xff]  }
 0x10a   :  { %2955 = vmatprep.subr.bf16.mxu0 %v4581_v56  ;;  %3242 = vmatprep.subr.bf16.mxu1 %v4584_v57  ;;  %v4676_v56 = vld [vmem:[#allocation5 + $0x76c] ss:$16 sps:$4 sm:$0xff]   ;;  %v4671_v57 = vld [vmem:[#allocation5 + $0x760] ss:$16 sps:$4 sm:$0xff]  }
 0x10d   :  { %2956 = vmatpush1.bf16.msra.mxu0 %v4579_v58  ;;  %3243 = vmatpush1.bf16.msra.mxu1 %v4582_v59  ;;  %v4674_v58 = vld [vmem:[#allocation5 + $0x768] ss:$16 sps:$4 sm:$0xff]   ;;  %v4679_v59 = vld [vmem:[#allocation5 + $0x784] ss:$16 sps:$4 sm:$0xff]  }
 0x10e   :  { %2957 = vmatprep.subr.bf16.mxu0 %v4587_v60  ;;  %3244 = vmatprep.subr.bf16.mxu1 %v4590_v61  ;;  %v4682_v60 = vld [vmem:[#allocation5 + $0x78c] ss:$16 sps:$4 sm:$0xff]   ;;  %v4677_v61 = vld [vmem:[#allocation5 + $0x780] ss:$16 sps:$4 sm:$0xff]  }
 0x111   :  { %2958 = vmatpush1.bf16.msra.mxu0 %v4585_v62  ;;  %3245 = vmatpush1.bf16.msra.mxu1 %v4588_v63  ;;  %v4680_v62 = vld [vmem:[#allocation5 + $0x788] ss:$16 sps:$4 sm:$0xff]   ;;  %v4685_v63 = vld [vmem:[#allocation5 + $0x7a4] ss:$16 sps:$4 sm:$0xff]  }
 0x112   :  { %2959 = vmatprep.subr.bf16.mxu0 %v4593_v0  ;;  %3246 = vmatprep.subr.bf16.mxu1 %v4596_v1  ;;  %v4688_v0 = vld [vmem:[#allocation5 + $0x7ac] ss:$16 sps:$4 sm:$0xff]   ;;  %v4683_v1 = vld [vmem:[#allocation5 + $0x7a0] ss:$16 sps:$4 sm:$0xff]  }
 0x115   :  { %2960 = vmatpush1.bf16.msra.mxu0 %v4591_v2  ;;  %3247 = vmatpush1.bf16.msra.mxu1 %v4594_v3  ;;  %v4686_v2 = vld [vmem:[#allocation5 + $0x7a8] ss:$16 sps:$4 sm:$0xff]   ;;  %v4691_v3 = vld [vmem:[#allocation5 + $0x7c4] ss:$16 sps:$4 sm:$0xff]  }
 0x116   :  { %2961 = vmatprep.subr.bf16.mxu0 %v4599_v4  ;;  %3248 = vmatprep.subr.bf16.mxu1 %v4602_v5  ;;  %v4694_v4 = vld [vmem:[#allocation5 + $0x7cc] ss:$16 sps:$4 sm:$0xff]   ;;  %v4689_v5 = vld [vmem:[#allocation5 + $0x7c0] ss:$16 sps:$4 sm:$0xff]  }
 0x119   :  { %2962 = vmatpush1.bf16.msra.mxu0 %v4597_v6  ;;  %3249 = vmatpush1.bf16.msra.mxu1 %v4600_v7  ;;  %v4692_v6 = vld [vmem:[#allocation5 + $0x7c8] ss:$16 sps:$4 sm:$0xff]   ;;  %v4697_v7 = vld [vmem:[#allocation5 + $0x7e4] ss:$16 sps:$4 sm:$0xff]  }
 0x11a   :  { %2972 = vmatprep.subr.bf16.mxu0 %v4607_v8  ;;  %3259 = vmatprep.subr.bf16.mxu1 %v4610_v9  ;;  %v4700_v8 = vld [vmem:[#allocation5 + $0x7ec] ss:$16 sps:$4 sm:$0xff]   ;;  %v4695_v9 = vld [vmem:[#allocation5 + $0x7e0] ss:$16 sps:$4 sm:$0xff]  }
 0x11c   :  { %2964 = vmatmul.mubr.bf16.vlgmr.msra.gmra.mrb[0].mxu0 %v3656_v12  ;;  %3251 = vmatmul.mubr.bf16.vlgmr.msra.gmra.mrb[0].mxu1 %v3656_v12  ;;  %v4705_v12 = vld [vmem:[#allocation5 + $0x804] ss:$16 sps:$4 sm:$0xff]  }
 0x11d   :  { %2973 = vmatpush1.bf16.msra.mxu0 %v4605_v10  ;;  %3260 = vmatpush1.bf16.msra.mxu1 %v4608_v13  ;;  %v4698_v10 = vld [vmem:[#allocation5 + $0x7e8] ss:$16 sps:$4 sm:$0xff]   ;;  %v4708_v13 = vld [vmem:[#allocation5 + $0x80c] ss:$16 sps:$4 sm:$0xff]  }
 0x11e   :  { %2974 = vmatprep.subr.bf16.mxu0 %v4613_v15  ;;  %3261 = vmatprep.subr.bf16.mxu1 %v4616_v16  ;;  %v4703_v15 = vld [vmem:[#allocation5 + $0x800] ss:$16 sps:$4 sm:$0xff]   ;;  %v3658_v16 = vcombine.low %v5249_v14, %v5249_v14  ;;  %v4717_v14 = vld [vmem:[#allocation5 + $0x844] ss:$16 sps:$4 sm:$0xff]  }
 0x11f   :  { %3004 = vmatprep.mubr.bf16.mxu0 %v3659_v17  ;;  %3291 = vmatprep.mubr.bf16.mxu1 %v3659_v17  ;;  %v5255_v17 = vld [vmem:[#allocation2 + $0x20] sm:$0xff] }
 0x121   :  { %2975 = vmatpush1.bf16.msra.mxu0 %v4611_v18  ;;  %3262 = vmatpush1.bf16.msra.mxu1 %v4614_v19  ;;  %v4706_v18 = vld [vmem:[#allocation5 + $0x808] ss:$16 sps:$4 sm:$0xff]   ;;  %v4711_v19 = vld [vmem:[#allocation5 + $0x824] ss:$16 sps:$4 sm:$0xff]  }
 0x122   :  { %2976 = vmatprep.subr.bf16.mxu0 %v4619_v20  ;;  %3263 = vmatprep.subr.bf16.mxu1 %v4622_v11  ;;  %v4714_v20 = vld [vmem:[#allocation5 + $0x82c] ss:$16 sps:$4 sm:$0xff]   ;;  %v3661_v11 = vcombine.high %v5255_v17, %v5255_v17 }
 0x125   :  { %2977 = vmatpush1.bf16.msra.mxu0 %v4617_v21  ;;  %3264 = vmatpush1.bf16.msra.mxu1 %v4620_v22  ;;  %v4709_v21 = vld [vmem:[#allocation5 + $0x820] ss:$16 sps:$4 sm:$0xff]   ;;  %v4712_v22 = vld [vmem:[#allocation5 + $0x828] ss:$16 sps:$4 sm:$0xff]  }
 0x126   :  { %2978 = vmatprep.subr.bf16.mxu0 %v4625_v23  ;;  %3265 = vmatprep.subr.bf16.mxu1 %v4628_v24  ;;  %v4720_v23 = vld [vmem:[#allocation5 + $0x84c] ss:$16 sps:$4 sm:$0xff]   ;;  %v4715_v24 = vld [vmem:[#allocation5 + $0x840] ss:$16 sps:$4 sm:$0xff]  }
 0x129   :  { %2979 = vmatpush1.bf16.msra.mxu0 %v4623_v25  ;;  %3266 = vmatpush1.bf16.msra.mxu1 %v4626_v26  ;;  %v4718_v25 = vld [vmem:[#allocation5 + $0x848] ss:$16 sps:$4 sm:$0xff]   ;;  %v4723_v26 = vld [vmem:[#allocation5 + $0x864] ss:$16 sps:$4 sm:$0xff]  }
 0x12a   :  { %2980 = vmatprep.subr.bf16.mxu0 %v4631_v27  ;;  %3267 = vmatprep.subr.bf16.mxu1 %v4634_v28  ;;  %v4726_v27 = vld [vmem:[#allocation5 + $0x86c] ss:$16 sps:$4 sm:$0xff]   ;;  %v4721_v28 = vld [vmem:[#allocation5 + $0x860] ss:$16 sps:$4 sm:$0xff]  }
 0x12d   :  { %2981 = vmatpush1.bf16.msra.mxu0 %v4629_v29  ;;  %3268 = vmatpush1.bf16.msra.mxu1 %v4632_v30  ;;  %v4724_v29 = vld [vmem:[#allocation5 + $0x868] ss:$16 sps:$4 sm:$0xff]   ;;  %v4729_v30 = vld [vmem:[#allocation5 + $0x884] ss:$16 sps:$4 sm:$0xff]  }
 0x12e   :  { %2982 = vmatprep.subr.bf16.mxu0 %v4637_v31  ;;  %3269 = vmatprep.subr.bf16.mxu1 %v4640_v32  ;;  %v4732_v31 = vld [vmem:[#allocation5 + $0x88c] ss:$16 sps:$4 sm:$0xff]   ;;  %v4727_v32 = vld [vmem:[#allocation5 + $0x880] ss:$16 sps:$4 sm:$0xff]  }
 0x131   :  { %2983 = vmatpush1.bf16.msra.mxu0 %v4635_v33  ;;  %3270 = vmatpush1.bf16.msra.mxu1 %v4638_v34  ;;  %v4730_v33 = vld [vmem:[#allocation5 + $0x888] ss:$16 sps:$4 sm:$0xff]   ;;  %v4735_v34 = vld [vmem:[#allocation5 + $0x8a4] ss:$16 sps:$4 sm:$0xff]  }
 0x132   :  { %2984 = vmatprep.subr.bf16.mxu0 %v4643_v35  ;;  %3271 = vmatprep.subr.bf16.mxu1 %v4646_v36  ;;  %v4738_v35 = vld [vmem:[#allocation5 + $0x8ac] ss:$16 sps:$4 sm:$0xff]   ;;  %v4733_v36 = vld [vmem:[#allocation5 + $0x8a0] ss:$16 sps:$4 sm:$0xff]  }
 0x135   :  { %2985 = vmatpush1.bf16.msra.mxu0 %v4641_v37  ;;  %3272 = vmatpush1.bf16.msra.mxu1 %v4644_v38  ;;  %v4736_v37 = vld [vmem:[#allocation5 + $0x8a8] ss:$16 sps:$4 sm:$0xff]   ;;  %v4741_v38 = vld [vmem:[#allocation5 + $0x8c4] ss:$16 sps:$4 sm:$0xff]  }
 0x136   :  { %2986 = vmatprep.subr.bf16.mxu0 %v4649_v39  ;;  %3273 = vmatprep.subr.bf16.mxu1 %v4652_v40  ;;  %v4744_v39 = vld [vmem:[#allocation5 + $0x8cc] ss:$16 sps:$4 sm:$0xff]   ;;  %v4739_v40 = vld [vmem:[#allocation5 + $0x8c0] ss:$16 sps:$4 sm:$0xff]  }
 0x139   :  { %2987 = vmatpush1.bf16.msra.mxu0 %v4647_v41  ;;  %3274 = vmatpush1.bf16.msra.mxu1 %v4650_v42  ;;  %v4742_v41 = vld [vmem:[#allocation5 + $0x8c8] ss:$16 sps:$4 sm:$0xff]   ;;  %v4747_v42 = vld [vmem:[#allocation5 + $0x8e4] ss:$16 sps:$4 sm:$0xff]  }
 0x13a   :  { %2988 = vmatprep.subr.bf16.mxu0 %v4655_v43  ;;  %3275 = vmatprep.subr.bf16.mxu1 %v4658_v44  ;;  %v4750_v43 = vld [vmem:[#allocation5 + $0x8ec] ss:$16 sps:$4 sm:$0xff]   ;;  %v4745_v44 = vld [vmem:[#allocation5 + $0x8e0] ss:$16 sps:$4 sm:$0xff]  }
 0x13d   :  { %2989 = vmatpush1.bf16.msra.mxu0 %v4653_v45  ;;  %3276 = vmatpush1.bf16.msra.mxu1 %v4656_v46  ;;  %v4748_v45 = vld [vmem:[#allocation5 + $0x8e8] ss:$16 sps:$4 sm:$0xff]   ;;  %v4753_v46 = vld [vmem:[#allocation5 + $0x904] ss:$16 sps:$4 sm:$0xff]  }
 0x13e   :  { %2990 = vmatprep.subr.bf16.mxu0 %v4661_v47  ;;  %3277 = vmatprep.subr.bf16.mxu1 %v4664_v48  ;;  %v4756_v47 = vld [vmem:[#allocation5 + $0x90c] ss:$16 sps:$4 sm:$0xff]   ;;  %v4751_v48 = vld [vmem:[#allocation5 + $0x900] ss:$16 sps:$4 sm:$0xff]  }
 0x141   :  { %2991 = vmatpush1.bf16.msra.mxu0 %v4659_v49  ;;  %3278 = vmatpush1.bf16.msra.mxu1 %v4662_v50  ;;  %v4754_v49 = vld [vmem:[#allocation5 + $0x908] ss:$16 sps:$4 sm:$0xff]   ;;  %v4759_v50 = vld [vmem:[#allocation5 + $0x924] ss:$16 sps:$4 sm:$0xff]  }
 0x142   :  { %2992 = vmatprep.subr.bf16.mxu0 %v4667_v51  ;;  %3279 = vmatprep.subr.bf16.mxu1 %v4670_v52  ;;  %v4762_v51 = vld [vmem:[#allocation5 + $0x92c] ss:$16 sps:$4 sm:$0xff]   ;;  %v4757_v52 = vld [vmem:[#allocation5 + $0x920] ss:$16 sps:$4 sm:$0xff]  }
 0x145   :  { %2993 = vmatpush1.bf16.msra.mxu0 %v4665_v53  ;;  %3280 = vmatpush1.bf16.msra.mxu1 %v4668_v54  ;;  %v4760_v53 = vld [vmem:[#allocation5 + $0x928] ss:$16 sps:$4 sm:$0xff]   ;;  %v4765_v54 = vld [vmem:[#allocation5 + $0x944] ss:$16 sps:$4 sm:$0xff]  }
 0x146   :  { %2994 = vmatprep.subr.bf16.mxu0 %v4673_v55  ;;  %3281 = vmatprep.subr.bf16.mxu1 %v4676_v56  ;;  %v4768_v55 = vld [vmem:[#allocation5 + $0x94c] ss:$16 sps:$4 sm:$0xff]   ;;  %v4763_v56 = vld [vmem:[#allocation5 + $0x940] ss:$16 sps:$4 sm:$0xff]  }
 0x149   :  { %2995 = vmatpush1.bf16.msra.mxu0 %v4671_v57  ;;  %3282 = vmatpush1.bf16.msra.mxu1 %v4674_v58  ;;  %v4766_v57 = vld [vmem:[#allocation5 + $0x948] ss:$16 sps:$4 sm:$0xff]   ;;  %v4771_v58 = vld [vmem:[#allocation5 + $0x964] ss:$16 sps:$4 sm:$0xff]  }
 0x14a   :  { %2996 = vmatprep.subr.bf16.mxu0 %v4679_v59  ;;  %3283 = vmatprep.subr.bf16.mxu1 %v4682_v60  ;;  %v4774_v59 = vld [vmem:[#allocation5 + $0x96c] ss:$16 sps:$4 sm:$0xff]   ;;  %v4769_v60 = vld [vmem:[#allocation5 + $0x960] ss:$16 sps:$4 sm:$0xff]  }
 0x14d   :  { %2997 = vmatpush1.bf16.msra.mxu0 %v4677_v61  ;;  %3284 = vmatpush1.bf16.msra.mxu1 %v4680_v62  ;;  %v4772_v61 = vld [vmem:[#allocation5 + $0x968] ss:$16 sps:$4 sm:$0xff]   ;;  %v4777_v62 = vld [vmem:[#allocation5 + $0x984] ss:$16 sps:$4 sm:$0xff]  }
 0x14e   :  { %2998 = vmatprep.subr.bf16.mxu0 %v4685_v63  ;;  %3285 = vmatprep.subr.bf16.mxu1 %v4688_v0  ;;  %v4780_v63 = vld [vmem:[#allocation5 + $0x98c] ss:$16 sps:$4 sm:$0xff]   ;;  %v4775_v0 = vld [vmem:[#allocation5 + $0x980] ss:$16 sps:$4 sm:$0xff]  }
 0x151   :  { %2999 = vmatpush1.bf16.msra.mxu0 %v4683_v1  ;;  %3286 = vmatpush1.bf16.msra.mxu1 %v4686_v2  ;;  %v4778_v1 = vld [vmem:[#allocation5 + $0x988] ss:$16 sps:$4 sm:$0xff]   ;;  %v4783_v2 = vld [vmem:[#allocation5 + $0x9a4] ss:$16 sps:$4 sm:$0xff]  }
 0x152   :  { %3000 = vmatprep.subr.bf16.mxu0 %v4691_v3  ;;  %3287 = vmatprep.subr.bf16.mxu1 %v4694_v4  ;;  %v4786_v3 = vld [vmem:[#allocation5 + $0x9ac] ss:$16 sps:$4 sm:$0xff]   ;;  %v4781_v4 = vld [vmem:[#allocation5 + $0x9a0] ss:$16 sps:$4 sm:$0xff]  }
 0x155   :  { %3001 = vmatpush1.bf16.msra.mxu0 %v4689_v5  ;;  %3288 = vmatpush1.bf16.msra.mxu1 %v4692_v6  ;;  %v4784_v5 = vld [vmem:[#allocation5 + $0x9a8] ss:$16 sps:$4 sm:$0xff]   ;;  %v4789_v6 = vld [vmem:[#allocation5 + $0x9c4] ss:$16 sps:$4 sm:$0xff]  }
 0x156   :  { %3002 = vmatprep.subr.bf16.mxu0 %v4697_v7  ;;  %3289 = vmatprep.subr.bf16.mxu1 %v4700_v8  ;;  %v4792_v7 = vld [vmem:[#allocation5 + $0x9cc] ss:$16 sps:$4 sm:$0xff]   ;;  %v4787_v8 = vld [vmem:[#allocation5 + $0x9c0] ss:$16 sps:$4 sm:$0xff]  }
 0x159   :  { %3003 = vmatpush1.bf16.msra.mxu0 %v4695_v9  ;;  %3290 = vmatpush1.bf16.msra.mxu1 %v4698_v10  ;;  %v4790_v9 = vld [vmem:[#allocation5 + $0x9c8] ss:$16 sps:$4 sm:$0xff]   ;;  %v4795_v10 = vld [vmem:[#allocation5 + $0x9e4] ss:$16 sps:$4 sm:$0xff]  }
 0x15a   :  { %3013 = vmatprep.subr.bf16.mxu0 %v4705_v12  ;;  %3300 = vmatprep.subr.bf16.mxu1 %v4708_v13  ;;  %v4798_v12 = vld [vmem:[#allocation5 + $0x9ec] ss:$16 sps:$4 sm:$0xff]   ;;  %v4793_v13 = vld [vmem:[#allocation5 + $0x9e0] ss:$16 sps:$4 sm:$0xff]  }
 0x15c   :  { %3005 = vmatmul.mubr.bf16.vlgmr.msra.gmra.mrb[0].mxu0 %v3658_v16  ;;  %3292 = vmatmul.mubr.bf16.vlgmr.msra.gmra.mrb[0].mxu1 %v3658_v16  ;;  %v4803_v16 = vld [vmem:[#allocation5 + $0xa04] ss:$16 sps:$4 sm:$0xff]  }
 0x15d   :  { %3014 = vmatpush1.bf16.msra.mxu0 %v4703_v15  ;;  %3301 = vmatpush1.bf16.msra.mxu1 %v4706_v18  ;;  %v4796_v15 = vld [vmem:[#allocation5 + $0x9e8] ss:$16 sps:$4 sm:$0xff]   ;;  %v4806_v18 = vld [vmem:[#allocation5 + $0xa0c] ss:$16 sps:$4 sm:$0xff]  }
 0x15e   :  { %3015 = vmatprep.subr.bf16.mxu0 %v4711_v19  ;;  %3302 = vmatprep.subr.bf16.mxu1 %v4714_v20  ;;  %v3660_v19 = vcombine.low %v5255_v17, %v5255_v17  ;;  %v5261_v20 = vld [vmem:[#allocation2 + $0x28] sm:$0xff] }
 0x15f   :  { %3045 = vmatprep.mubr.bf16.mxu0 %v3661_v11  ;;  %3332 = vmatprep.mubr.bf16.mxu1 %v3661_v11  ;;  %v4801_v11 = vld [vmem:[#allocation5 + $0xa00] ss:$16 sps:$4 sm:$0xff]   ;;  %v4815_v17 = vld [vmem:[#allocation5 + $0xa44] ss:$16 sps:$4 sm:$0xff]  }
 0x161   :  { %3016 = vmatpush1.bf16.msra.mxu0 %v4709_v21  ;;  %3303 = vmatpush1.bf16.msra.mxu1 %v4712_v22  ;;  %v4804_v21 = vld [vmem:[#allocation5 + $0xa08] ss:$16 sps:$4 sm:$0xff]   ;;  %v4809_v22 = vld [vmem:[#allocation5 + $0xa24] ss:$16 sps:$4 sm:$0xff]  }
 0x162   :  { %3017 = vmatprep.subr.bf16.mxu0 %v4717_v14  ;;  %3304 = vmatprep.subr.bf16.mxu1 %v4720_v23  ;;  %v4812_v14 = vld [vmem:[#allocation5 + $0xa2c] ss:$16 sps:$4 sm:$0xff]   ;;  %v3663_v23 = vcombine.high %v5261_v20, %v5261_v20 }
 0x165   :  { %3018 = vmatpush1.bf16.msra.mxu0 %v4715_v24  ;;  %3305 = vmatpush1.bf16.msra.mxu1 %v4718_v25  ;;  %v4807_v24 = vld [vmem:[#allocation5 + $0xa20] ss:$16 sps:$4 sm:$0xff]   ;;  %v4810_v25 = vld [vmem:[#allocation5 + $0xa28] ss:$16 sps:$4 sm:$0xff]  }
 0x166   :  { %3019 = vmatprep.subr.bf16.mxu0 %v4723_v26  ;;  %3306 = vmatprep.subr.bf16.mxu1 %v4726_v27  ;;  %v4818_v26 = vld [vmem:[#allocation5 + $0xa4c] ss:$16 sps:$4 sm:$0xff]   ;;  %v4813_v27 = vld [vmem:[#allocation5 + $0xa40] ss:$16 sps:$4 sm:$0xff]  }
 0x169   :  { %3020 = vmatpush1.bf16.msra.mxu0 %v4721_v28  ;;  %3307 = vmatpush1.bf16.msra.mxu1 %v4724_v29  ;;  %v4816_v28 = vld [vmem:[#allocation5 + $0xa48] ss:$16 sps:$4 sm:$0xff]   ;;  %v4821_v29 = vld [vmem:[#allocation5 + $0xa64] ss:$16 sps:$4 sm:$0xff]  }
 0x16a   :  { %3021 = vmatprep.subr.bf16.mxu0 %v4729_v30  ;;  %3308 = vmatprep.subr.bf16.mxu1 %v4732_v31  ;;  %v4824_v30 = vld [vmem:[#allocation5 + $0xa6c] ss:$16 sps:$4 sm:$0xff]   ;;  %v4819_v31 = vld [vmem:[#allocation5 + $0xa60] ss:$16 sps:$4 sm:$0xff]  }
 0x16d   :  { %3022 = vmatpush1.bf16.msra.mxu0 %v4727_v32  ;;  %3309 = vmatpush1.bf16.msra.mxu1 %v4730_v33  ;;  %v4822_v32 = vld [vmem:[#allocation5 + $0xa68] ss:$16 sps:$4 sm:$0xff]   ;;  %v4827_v33 = vld [vmem:[#allocation5 + $0xa84] ss:$16 sps:$4 sm:$0xff]  }
 0x16e   :  { %3023 = vmatprep.subr.bf16.mxu0 %v4735_v34  ;;  %3310 = vmatprep.subr.bf16.mxu1 %v4738_v35  ;;  %v4830_v34 = vld [vmem:[#allocation5 + $0xa8c] ss:$16 sps:$4 sm:$0xff]   ;;  %v4825_v35 = vld [vmem:[#allocation5 + $0xa80] ss:$16 sps:$4 sm:$0xff]  }
 0x171   :  { %3024 = vmatpush1.bf16.msra.mxu0 %v4733_v36  ;;  %3311 = vmatpush1.bf16.msra.mxu1 %v4736_v37  ;;  %v4828_v36 = vld [vmem:[#allocation5 + $0xa88] ss:$16 sps:$4 sm:$0xff]   ;;  %v4833_v37 = vld [vmem:[#allocation5 + $0xaa4] ss:$16 sps:$4 sm:$0xff]  }
 0x172   :  { %3025 = vmatprep.subr.bf16.mxu0 %v4741_v38  ;;  %3312 = vmatprep.subr.bf16.mxu1 %v4744_v39  ;;  %v4836_v38 = vld [vmem:[#allocation5 + $0xaac] ss:$16 sps:$4 sm:$0xff]   ;;  %v4831_v39 = vld [vmem:[#allocation5 + $0xaa0] ss:$16 sps:$4 sm:$0xff]  }
 0x175   :  { %3026 = vmatpush1.bf16.msra.mxu0 %v4739_v40  ;;  %3313 = vmatpush1.bf16.msra.mxu1 %v4742_v41  ;;  %v4834_v40 = vld [vmem:[#allocation5 + $0xaa8] ss:$16 sps:$4 sm:$0xff]   ;;  %v4839_v41 = vld [vmem:[#allocation5 + $0xac4] ss:$16 sps:$4 sm:$0xff]  }
 0x176   :  { %3027 = vmatprep.subr.bf16.mxu0 %v4747_v42  ;;  %3314 = vmatprep.subr.bf16.mxu1 %v4750_v43  ;;  %v4842_v42 = vld [vmem:[#allocation5 + $0xacc] ss:$16 sps:$4 sm:$0xff]   ;;  %v4837_v43 = vld [vmem:[#allocation5 + $0xac0] ss:$16 sps:$4 sm:$0xff]  }
 0x179   :  { %3028 = vmatpush1.bf16.msra.mxu0 %v4745_v44  ;;  %3315 = vmatpush1.bf16.msra.mxu1 %v4748_v45  ;;  %v4840_v44 = vld [vmem:[#allocation5 + $0xac8] ss:$16 sps:$4 sm:$0xff]   ;;  %v4845_v45 = vld [vmem:[#allocation5 + $0xae4] ss:$16 sps:$4 sm:$0xff]  }
 0x17a   :  { %3029 = vmatprep.subr.bf16.mxu0 %v4753_v46  ;;  %3316 = vmatprep.subr.bf16.mxu1 %v4756_v47  ;;  %v4848_v46 = vld [vmem:[#allocation5 + $0xaec] ss:$16 sps:$4 sm:$0xff]   ;;  %v4843_v47 = vld [vmem:[#allocation5 + $0xae0] ss:$16 sps:$4 sm:$0xff]  }
 0x17d   :  { %3030 = vmatpush1.bf16.msra.mxu0 %v4751_v48  ;;  %3317 = vmatpush1.bf16.msra.mxu1 %v4754_v49  ;;  %v4846_v48 = vld [vmem:[#allocation5 + $0xae8] ss:$16 sps:$4 sm:$0xff]   ;;  %v4851_v49 = vld [vmem:[#allocation5 + $0xb04] ss:$16 sps:$4 sm:$0xff]  }
 0x17e   :  { %3031 = vmatprep.subr.bf16.mxu0 %v4759_v50  ;;  %3318 = vmatprep.subr.bf16.mxu1 %v4762_v51  ;;  %v4854_v50 = vld [vmem:[#allocation5 + $0xb0c] ss:$16 sps:$4 sm:$0xff]   ;;  %v4849_v51 = vld [vmem:[#allocation5 + $0xb00] ss:$16 sps:$4 sm:$0xff]  }
 0x181   :  { %3032 = vmatpush1.bf16.msra.mxu0 %v4757_v52  ;;  %3319 = vmatpush1.bf16.msra.mxu1 %v4760_v53  ;;  %v4852_v52 = vld [vmem:[#allocation5 + $0xb08] ss:$16 sps:$4 sm:$0xff]   ;;  %v4857_v53 = vld [vmem:[#allocation5 + $0xb24] ss:$16 sps:$4 sm:$0xff]  }
 0x182   :  { %3033 = vmatprep.subr.bf16.mxu0 %v4765_v54  ;;  %3320 = vmatprep.subr.bf16.mxu1 %v4768_v55  ;;  %v4860_v54 = vld [vmem:[#allocation5 + $0xb2c] ss:$16 sps:$4 sm:$0xff]   ;;  %v4855_v55 = vld [vmem:[#allocation5 + $0xb20] ss:$16 sps:$4 sm:$0xff]  }
 0x185   :  { %3034 = vmatpush1.bf16.msra.mxu0 %v4763_v56  ;;  %3321 = vmatpush1.bf16.msra.mxu1 %v4766_v57  ;;  %v4858_v56 = vld [vmem:[#allocation5 + $0xb28] ss:$16 sps:$4 sm:$0xff]   ;;  %v4863_v57 = vld [vmem:[#allocation5 + $0xb44] ss:$16 sps:$4 sm:$0xff]  }
 0x186   :  { %3035 = vmatprep.subr.bf16.mxu0 %v4771_v58  ;;  %3322 = vmatprep.subr.bf16.mxu1 %v4774_v59  ;;  %v4866_v58 = vld [vmem:[#allocation5 + $0xb4c] ss:$16 sps:$4 sm:$0xff]   ;;  %v4861_v59 = vld [vmem:[#allocation5 + $0xb40] ss:$16 sps:$4 sm:$0xff]  }
 0x189   :  { %3036 = vmatpush1.bf16.msra.mxu0 %v4769_v60  ;;  %3323 = vmatpush1.bf16.msra.mxu1 %v4772_v61  ;;  %v4864_v60 = vld [vmem:[#allocation5 + $0xb48] ss:$16 sps:$4 sm:$0xff]   ;;  %v4869_v61 = vld [vmem:[#allocation5 + $0xb64] ss:$16 sps:$4 sm:$0xff]  }
 0x18a   :  { %3037 = vmatprep.subr.bf16.mxu0 %v4777_v62  ;;  %3324 = vmatprep.subr.bf16.mxu1 %v4780_v63  ;;  %v4872_v62 = vld [vmem:[#allocation5 + $0xb6c] ss:$16 sps:$4 sm:$0xff]   ;;  %v4867_v63 = vld [vmem:[#allocation5 + $0xb60] ss:$16 sps:$4 sm:$0xff]  }
 0x18d   :  { %3038 = vmatpush1.bf16.msra.mxu0 %v4775_v0  ;;  %3325 = vmatpush1.bf16.msra.mxu1 %v4778_v1  ;;  %v4870_v0 = vld [vmem:[#allocation5 + $0xb68] ss:$16 sps:$4 sm:$0xff]   ;;  %v4875_v1 = vld [vmem:[#allocation5 + $0xb84] ss:$16 sps:$4 sm:$0xff]  }
 0x18e   :  { %3039 = vmatprep.subr.bf16.mxu0 %v4783_v2  ;;  %3326 = vmatprep.subr.bf16.mxu1 %v4786_v3  ;;  %v4878_v2 = vld [vmem:[#allocation5 + $0xb8c] ss:$16 sps:$4 sm:$0xff]   ;;  %v4873_v3 = vld [vmem:[#allocation5 + $0xb80] ss:$16 sps:$4 sm:$0xff]  }
 0x191   :  { %3040 = vmatpush1.bf16.msra.mxu0 %v4781_v4  ;;  %3327 = vmatpush1.bf16.msra.mxu1 %v4784_v5  ;;  %v4876_v4 = vld [vmem:[#allocation5 + $0xb88] ss:$16 sps:$4 sm:$0xff]   ;;  %v4881_v5 = vld [vmem:[#allocation5 + $0xba4] ss:$16 sps:$4 sm:$0xff]  }
 0x192   :  { %3041 = vmatprep.subr.bf16.mxu0 %v4789_v6  ;;  %3328 = vmatprep.subr.bf16.mxu1 %v4792_v7  ;;  %v4884_v6 = vld [vmem:[#allocation5 + $0xbac] ss:$16 sps:$4 sm:$0xff]   ;;  %v4879_v7 = vld [vmem:[#allocation5 + $0xba0] ss:$16 sps:$4 sm:$0xff]  }
 0x195   :  { %3042 = vmatpush1.bf16.msra.mxu0 %v4787_v8  ;;  %3329 = vmatpush1.bf16.msra.mxu1 %v4790_v9  ;;  %v4882_v8 = vld [vmem:[#allocation5 + $0xba8] ss:$16 sps:$4 sm:$0xff]   ;;  %v4887_v9 = vld [vmem:[#allocation5 + $0xbc4] ss:$16 sps:$4 sm:$0xff]  }
 0x196   :  { %3043 = vmatprep.subr.bf16.mxu0 %v4795_v10  ;;  %3330 = vmatprep.subr.bf16.mxu1 %v4798_v12  ;;  %v4890_v10 = vld [vmem:[#allocation5 + $0xbcc] ss:$16 sps:$4 sm:$0xff]   ;;  %v4885_v12 = vld [vmem:[#allocation5 + $0xbc0] ss:$16 sps:$4 sm:$0xff]  }
 0x199   :  { %3044 = vmatpush1.bf16.msra.mxu0 %v4793_v13  ;;  %3331 = vmatpush1.bf16.msra.mxu1 %v4796_v15  ;;  %v4888_v13 = vld [vmem:[#allocation5 + $0xbc8] ss:$16 sps:$4 sm:$0xff]   ;;  %v4893_v15 = vld [vmem:[#allocation5 + $0xbe4] ss:$16 sps:$4 sm:$0xff]  }
 0x19a   :  { %3054 = vmatprep.subr.bf16.mxu0 %v4803_v16  ;;  %3341 = vmatprep.subr.bf16.mxu1 %v4806_v18  ;;  %v4896_v16 = vld [vmem:[#allocation5 + $0xbec] ss:$16 sps:$4 sm:$0xff]   ;;  %v4891_v18 = vld [vmem:[#allocation5 + $0xbe0] ss:$16 sps:$4 sm:$0xff]  }
 0x19c   :  { %3046 = vmatmul.mubr.bf16.vlgmr.msra.gmra.mrb[0].mxu0 %v3660_v19  ;;  %3333 = vmatmul.mubr.bf16.vlgmr.msra.gmra.mrb[0].mxu1 %v3660_v19  ;;  %v4894_v19 = vld [vmem:[#allocation5 + $0xbe8] ss:$16 sps:$4 sm:$0xff]  }
 0x19d   :  { %3055 = vmatpush1.bf16.msra.mxu0 %v4801_v11  ;;  %3342 = vmatpush1.bf16.msra.mxu1 %v4804_v21  ;;  %v4901_v11 = vld [vmem:[#allocation5 + $0xc04] ss:$16 sps:$4 sm:$0xff]   ;;  %v4904_v21 = vld [vmem:[#allocation5 + $0xc0c] ss:$16 sps:$4 sm:$0xff]  }
 0x19e   :  { %3056 = vmatprep.subr.bf16.mxu0 %v4809_v22  ;;  %3343 = vmatprep.subr.bf16.mxu1 %v4812_v14  ;;  %v3662_v22 = vcombine.low %v5261_v20, %v5261_v20  ;;  %v5267_v14 = vld [vmem:[#allocation2 + $0x30] sm:$0xff]  ;;  %v4913_v20 = vld [vmem:[#allocation5 + $0xc44] ss:$16 sps:$4 sm:$0xff]  }
 0x19f   :  { %3086 = vmatprep.mubr.bf16.mxu0 %v3663_v23  ;;  %3373 = vmatprep.mubr.bf16.mxu1 %v3663_v23  ;;  %v4899_v23 = vld [vmem:[#allocation5 + $0xc00] ss:$16 sps:$4 sm:$0xff]  }
 0x1a1   :  { %3057 = vmatpush1.bf16.msra.mxu0 %v4807_v24  ;;  %3344 = vmatpush1.bf16.msra.mxu1 %v4810_v25  ;;  %v4902_v24 = vld [vmem:[#allocation5 + $0xc08] ss:$16 sps:$4 sm:$0xff]   ;;  %v4907_v25 = vld [vmem:[#allocation5 + $0xc24] ss:$16 sps:$4 sm:$0xff]  }
 0x1a2   :  { %3058 = vmatprep.subr.bf16.mxu0 %v4815_v17  ;;  %3345 = vmatprep.subr.bf16.mxu1 %v4818_v26  ;;  %v4910_v17 = vld [vmem:[#allocation5 + $0xc2c] ss:$16 sps:$4 sm:$0xff]   ;;  %v3665_v26 = vcombine.high %v5267_v14, %v5267_v14 }
 0x1a5   :  { %3059 = vmatpush1.bf16.msra.mxu0 %v4813_v27  ;;  %3346 = vmatpush1.bf16.msra.mxu1 %v4816_v28  ;;  %v4905_v27 = vld [vmem:[#allocation5 + $0xc20] ss:$16 sps:$4 sm:$0xff]   ;;  %v4908_v28 = vld [vmem:[#allocation5 + $0xc28] ss:$16 sps:$4 sm:$0xff]  }
 0x1a6   :  { %3060 = vmatprep.subr.bf16.mxu0 %v4821_v29  ;;  %3347 = vmatprep.subr.bf16.mxu1 %v4824_v30  ;;  %v4916_v29 = vld [vmem:[#allocation5 + $0xc4c] ss:$16 sps:$4 sm:$0xff]   ;;  %v4911_v30 = vld [vmem:[#allocation5 + $0xc40] ss:$16 sps:$4 sm:$0xff]  }
 0x1a9   :  { %3061 = vmatpush1.bf16.msra.mxu0 %v4819_v31  ;;  %3348 = vmatpush1.bf16.msra.mxu1 %v4822_v32  ;;  %v4914_v31 = vld [vmem:[#allocation5 + $0xc48] ss:$16 sps:$4 sm:$0xff]   ;;  %v4919_v32 = vld [vmem:[#allocation5 + $0xc64] ss:$16 sps:$4 sm:$0xff]  }
 0x1aa   :  { %3062 = vmatprep.subr.bf16.mxu0 %v4827_v33  ;;  %3349 = vmatprep.subr.bf16.mxu1 %v4830_v34  ;;  %v4922_v33 = vld [vmem:[#allocation5 + $0xc6c] ss:$16 sps:$4 sm:$0xff]   ;;  %v4917_v34 = vld [vmem:[#allocation5 + $0xc60] ss:$16 sps:$4 sm:$0xff]  }
 0x1ad   :  { %3063 = vmatpush1.bf16.msra.mxu0 %v4825_v35  ;;  %3350 = vmatpush1.bf16.msra.mxu1 %v4828_v36  ;;  %v4920_v35 = vld [vmem:[#allocation5 + $0xc68] ss:$16 sps:$4 sm:$0xff]   ;;  %v4925_v36 = vld [vmem:[#allocation5 + $0xc84] ss:$16 sps:$4 sm:$0xff]  }
 0x1ae   :  { %3064 = vmatprep.subr.bf16.mxu0 %v4833_v37  ;;  %3351 = vmatprep.subr.bf16.mxu1 %v4836_v38  ;;  %v4928_v37 = vld [vmem:[#allocation5 + $0xc8c] ss:$16 sps:$4 sm:$0xff]   ;;  %v4923_v38 = vld [vmem:[#allocation5 + $0xc80] ss:$16 sps:$4 sm:$0xff]  }
 0x1b1   :  { %3065 = vmatpush1.bf16.msra.mxu0 %v4831_v39  ;;  %3352 = vmatpush1.bf16.msra.mxu1 %v4834_v40  ;;  %v4926_v39 = vld [vmem:[#allocation5 + $0xc88] ss:$16 sps:$4 sm:$0xff]   ;;  %v4931_v40 = vld [vmem:[#allocation5 + $0xca4] ss:$16 sps:$4 sm:$0xff]  }
 0x1b2   :  { %3066 = vmatprep.subr.bf16.mxu0 %v4839_v41  ;;  %3353 = vmatprep.subr.bf16.mxu1 %v4842_v42  ;;  %v4934_v41 = vld [vmem:[#allocation5 + $0xcac] ss:$16 sps:$4 sm:$0xff]   ;;  %v4929_v42 = vld [vmem:[#allocation5 + $0xca0] ss:$16 sps:$4 sm:$0xff]  }
 0x1b5   :  { %3067 = vmatpush1.bf16.msra.mxu0 %v4837_v43  ;;  %3354 = vmatpush1.bf16.msra.mxu1 %v4840_v44  ;;  %v4932_v43 = vld [vmem:[#allocation5 + $0xca8] ss:$16 sps:$4 sm:$0xff]   ;;  %v4937_v44 = vld [vmem:[#allocation5 + $0xcc4] ss:$16 sps:$4 sm:$0xff]  }
 0x1b6   :  { %3068 = vmatprep.subr.bf16.mxu0 %v4845_v45  ;;  %3355 = vmatprep.subr.bf16.mxu1 %v4848_v46  ;;  %v4940_v45 = vld [vmem:[#allocation5 + $0xccc] ss:$16 sps:$4 sm:$0xff]   ;;  %v4935_v46 = vld [vmem:[#allocation5 + $0xcc0] ss:$16 sps:$4 sm:$0xff]  }
 0x1b9   :  { %3069 = vmatpush1.bf16.msra.mxu0 %v4843_v47  ;;  %3356 = vmatpush1.bf16.msra.mxu1 %v4846_v48  ;;  %v4938_v47 = vld [vmem:[#allocation5 + $0xcc8] ss:$16 sps:$4 sm:$0xff]   ;;  %v4943_v48 = vld [vmem:[#allocation5 + $0xce4] ss:$16 sps:$4 sm:$0xff]  }
 0x1ba   :  { %3070 = vmatprep.subr.bf16.mxu0 %v4851_v49  ;;  %3357 = vmatprep.subr.bf16.mxu1 %v4854_v50  ;;  %v4946_v49 = vld [vmem:[#allocation5 + $0xcec] ss:$16 sps:$4 sm:$0xff]   ;;  %v4941_v50 = vld [vmem:[#allocation5 + $0xce0] ss:$16 sps:$4 sm:$0xff]  }
 0x1bd   :  { %3071 = vmatpush1.bf16.msra.mxu0 %v4849_v51  ;;  %3358 = vmatpush1.bf16.msra.mxu1 %v4852_v52  ;;  %v4944_v51 = vld [vmem:[#allocation5 + $0xce8] ss:$16 sps:$4 sm:$0xff]   ;;  %v4949_v52 = vld [vmem:[#allocation5 + $0xd04] ss:$16 sps:$4 sm:$0xff]  }
 0x1be   :  { %3072 = vmatprep.subr.bf16.mxu0 %v4857_v53  ;;  %3359 = vmatprep.subr.bf16.mxu1 %v4860_v54  ;;  %v4952_v53 = vld [vmem:[#allocation5 + $0xd0c] ss:$16 sps:$4 sm:$0xff]   ;;  %v4947_v54 = vld [vmem:[#allocation5 + $0xd00] ss:$16 sps:$4 sm:$0xff]  }
 0x1c1   :  { %3073 = vmatpush1.bf16.msra.mxu0 %v4855_v55  ;;  %3360 = vmatpush1.bf16.msra.mxu1 %v4858_v56  ;;  %v4950_v55 = vld [vmem:[#allocation5 + $0xd08] ss:$16 sps:$4 sm:$0xff]   ;;  %v4955_v56 = vld [vmem:[#allocation5 + $0xd24] ss:$16 sps:$4 sm:$0xff]  }
 0x1c2   :  { %3074 = vmatprep.subr.bf16.mxu0 %v4863_v57  ;;  %3361 = vmatprep.subr.bf16.mxu1 %v4866_v58  ;;  %v4958_v57 = vld [vmem:[#allocation5 + $0xd2c] ss:$16 sps:$4 sm:$0xff]   ;;  %v4953_v58 = vld [vmem:[#allocation5 + $0xd20] ss:$16 sps:$4 sm:$0xff]  }
 0x1c5   :  { %3075 = vmatpush1.bf16.msra.mxu0 %v4861_v59  ;;  %3362 = vmatpush1.bf16.msra.mxu1 %v4864_v60  ;;  %v4956_v59 = vld [vmem:[#allocation5 + $0xd28] ss:$16 sps:$4 sm:$0xff]   ;;  %v4961_v60 = vld [vmem:[#allocation5 + $0xd44] ss:$16 sps:$4 sm:$0xff]  }
 0x1c6   :  { %3076 = vmatprep.subr.bf16.mxu0 %v4869_v61  ;;  %3363 = vmatprep.subr.bf16.mxu1 %v4872_v62  ;;  %v4964_v61 = vld [vmem:[#allocation5 + $0xd4c] ss:$16 sps:$4 sm:$0xff]   ;;  %v4959_v62 = vld [vmem:[#allocation5 + $0xd40] ss:$16 sps:$4 sm:$0xff]  }
 0x1c9   :  { %3077 = vmatpush1.bf16.msra.mxu0 %v4867_v63  ;;  %3364 = vmatpush1.bf16.msra.mxu1 %v4870_v0  ;;  %v4962_v63 = vld [vmem:[#allocation5 + $0xd48] ss:$16 sps:$4 sm:$0xff]   ;;  %v4967_v0 = vld [vmem:[#allocation5 + $0xd64] ss:$16 sps:$4 sm:$0xff]  }
 0x1ca   :  { %3078 = vmatprep.subr.bf16.mxu0 %v4875_v1  ;;  %3365 = vmatprep.subr.bf16.mxu1 %v4878_v2  ;;  %v4970_v1 = vld [vmem:[#allocation5 + $0xd6c] ss:$16 sps:$4 sm:$0xff]   ;;  %v4965_v2 = vld [vmem:[#allocation5 + $0xd60] ss:$16 sps:$4 sm:$0xff]  }
 0x1cd   :  { %3079 = vmatpush1.bf16.msra.mxu0 %v4873_v3  ;;  %3366 = vmatpush1.bf16.msra.mxu1 %v4876_v4  ;;  %v4968_v3 = vld [vmem:[#allocation5 + $0xd68] ss:$16 sps:$4 sm:$0xff]   ;;  %v4973_v4 = vld [vmem:[#allocation5 + $0xd84] ss:$16 sps:$4 sm:$0xff]  }
 0x1ce   :  { %3080 = vmatprep.subr.bf16.mxu0 %v4881_v5  ;;  %3367 = vmatprep.subr.bf16.mxu1 %v4884_v6  ;;  %v4976_v5 = vld [vmem:[#allocation5 + $0xd8c] ss:$16 sps:$4 sm:$0xff]   ;;  %v4971_v6 = vld [vmem:[#allocation5 + $0xd80] ss:$16 sps:$4 sm:$0xff]  }
 0x1d1   :  { %3081 = vmatpush1.bf16.msra.mxu0 %v4879_v7  ;;  %3368 = vmatpush1.bf16.msra.mxu1 %v4882_v8  ;;  %v4974_v7 = vld [vmem:[#allocation5 + $0xd88] ss:$16 sps:$4 sm:$0xff]   ;;  %v4979_v8 = vld [vmem:[#allocation5 + $0xda4] ss:$16 sps:$4 sm:$0xff]  }
 0x1d2   :  { %3082 = vmatprep.subr.bf16.mxu0 %v4887_v9  ;;  %3369 = vmatprep.subr.bf16.mxu1 %v4890_v10  ;;  %v4982_v9 = vld [vmem:[#allocation5 + $0xdac] ss:$16 sps:$4 sm:$0xff]   ;;  %v4977_v10 = vld [vmem:[#allocation5 + $0xda0] ss:$16 sps:$4 sm:$0xff]  }
 0x1d5   :  { %3083 = vmatpush1.bf16.msra.mxu0 %v4885_v12  ;;  %3370 = vmatpush1.bf16.msra.mxu1 %v4888_v13  ;;  %v4980_v12 = vld [vmem:[#allocation5 + $0xda8] ss:$16 sps:$4 sm:$0xff]   ;;  %v4985_v13 = vld [vmem:[#allocation5 + $0xdc4] ss:$16 sps:$4 sm:$0xff]  }
 0x1d6   :  { %3084 = vmatprep.subr.bf16.mxu0 %v4893_v15  ;;  %3371 = vmatprep.subr.bf16.mxu1 %v4896_v16  ;;  %v4988_v15 = vld [vmem:[#allocation5 + $0xdcc] ss:$16 sps:$4 sm:$0xff]   ;;  %v4983_v16 = vld [vmem:[#allocation5 + $0xdc0] ss:$16 sps:$4 sm:$0xff]  }
 0x1d9   :  { %3085 = vmatpush1.bf16.msra.mxu0 %v4891_v18  ;;  %3372 = vmatpush1.bf16.msra.mxu1 %v4894_v19  ;;  %v4986_v18 = vld [vmem:[#allocation5 + $0xdc8] ss:$16 sps:$4 sm:$0xff]   ;;  %v4991_v19 = vld [vmem:[#allocation5 + $0xde4] ss:$16 sps:$4 sm:$0xff]  }
 0x1da   :  { %3095 = vmatprep.subr.bf16.mxu0 %v4901_v11  ;;  %3382 = vmatprep.subr.bf16.mxu1 %v4904_v21  ;;  %v4994_v11 = vld [vmem:[#allocation5 + $0xdec] ss:$16 sps:$4 sm:$0xff]   ;;  %v3439_v21 = vld [vmem:[#allocation8 + $0x80] sm:$0xff] }
 0x1dc   :  { %3087 = vmatmul.mubr.bf16.vlgmr.msra.gmra.mrb[0].mxu0 %v3662_v22  ;;  %3374 = vmatmul.mubr.bf16.vlgmr.msra.gmra.mrb[0].mxu1 %v3662_v22  ;;  %v3440_v22 = vld [vmem:[#allocation8 + $0x88] sm:$0xff] }
 0x1dd   :  { %3096 = vmatpush1.bf16.msra.mxu0 %v4899_v23  ;;  %3383 = vmatpush1.bf16.msra.mxu1 %v4902_v24  ;;  %v3471_v23 = vld [vmem:[#allocation8 + $0x180] sm:$0xff]  ;;  %v3472_v24 = vld [vmem:[#allocation8 + $0x188] sm:$0xff] }
 0x1de   :  { %3097 = vmatprep.subr.bf16.mxu0 %v4907_v25  ;;  %3384 = vmatprep.subr.bf16.mxu1 %v4910_v17  ;;  %v4989_v25 = vld [vmem:[#allocation5 + $0xde0] ss:$16 sps:$4 sm:$0xff]   ;;  %v4992_v17 = vld [vmem:[#allocation5 + $0xde8] ss:$16 sps:$4 sm:$0xff]  }
 0x1df   :  { %3127 = vmatprep.mubr.bf16.mxu0 %v3665_v26  ;;  %3414 = vmatprep.mubr.bf16.mxu1 %v3665_v26  ;;  %v3423_v26 = vld [vmem:[#allocation8] sm:$0xff] }
 0x1e1   :  { %3098 = vmatpush1.bf16.msra.mxu0 %v4905_v27  ;;  %3385 = vmatpush1.bf16.msra.mxu1 %v4908_v28  ;;  %v3424_v27 = vld [vmem:[#allocation8 + $0x8] sm:$0xff]  ;;  %v4185_v28 = vpack.c.bf16 %v3440_v22, %v3439_v21  ;;  %v3482_v21 = vld [vmem:[#allocation8 + $0x1d8] sm:$0xff] }
 0x1e2   :  { %3099 = vmatprep.subr.bf16.mxu0 %v4913_v20  ;;  %3386 = vmatprep.subr.bf16.mxu1 %v4916_v29  ;;  %v4217_v20 = vpack.c.bf16 %v3472_v24, %v3471_v23  ;;  %v3455_v29 = vld [vmem:[#allocation8 + $0x100] sm:$0xff]  ;;  %v3433_v24 = vld [vmem:[#allocation8 + $0x50] sm:$0xff] }
 0x1e5   :  { %3100 = vmatpush1.bf16.msra.mxu0 %v4911_v30  ;;  %3387 = vmatpush1.bf16.msra.mxu1 %v4914_v31  ;;  %v3456_v30 = vld [vmem:[#allocation8 + $0x108] sm:$0xff]  ;;  %v3441_v31 = vld [vmem:[#allocation8 + $0x90] sm:$0xff] }
 0x1e6   :  { %3101 = vmatprep.subr.bf16.mxu0 %v4919_v32  ;;  %3388 = vmatprep.subr.bf16.mxu1 %v4922_v33  ;;  %v3442_v32 = vld [vmem:[#allocation8 + $0x98] sm:$0xff]  ;;  %v3473_v33 = vld [vmem:[#allocation8 + $0x190] sm:$0xff] }
 0x1e9   :  { %3102 = vmatpush1.bf16.msra.mxu0 %v4917_v34  ;;  %3389 = vmatpush1.bf16.msra.mxu1 %v4920_v35  ;;  %v3474_v34 = vld [vmem:[#allocation8 + $0x198] sm:$0xff]  ;;  %v3664_v35 = vcombine.low %v5267_v14, %v5267_v14 }
 0x1ea   :  { %3103 = vmatprep.subr.bf16.mxu0 %v4925_v36  ;;  %3390 = vmatprep.subr.bf16.mxu1 %v4928_v37  ;;  %v4187_v36 = vpack.c.bf16 %v3424_v27, %v3423_v26  ;;  %v4219_v37 = vpack.c.bf16 %v3456_v30, %v3455_v29  ;;  %v3465_v27 = vld [vmem:[#allocation8 + $0x150] sm:$0xff]  ;;  %v3452_v29 = vld [vmem:[#allocation8 + $0xe8] sm:$0xff]  ;;  %v3483_v30 = vld [vmem:[#allocation8 + $0x1e0] sm:$0xff] }
 0x1ed   :  { %3104 = vmatpush1.bf16.msra.mxu0 %v4923_v38  ;;  %3391 = vmatpush1.bf16.msra.mxu1 %v4926_v39  ;;  %v3425_v38 = vld [vmem:[#allocation8 + $0x10] sm:$0xff]  ;;  %v3426_v39 = vld [vmem:[#allocation8 + $0x18] sm:$0xff] }
 0x1ee   :  { %3105 = vmatprep.subr.bf16.mxu0 %v4931_v40  ;;  %3392 = vmatprep.subr.bf16.mxu1 %v4934_v41  ;;  %v4189_v40 = vpack.c.bf16 %v3442_v32, %v3441_v31  ;;  %v4221_v41 = vpack.c.bf16 %v3474_v34, %v3473_v33  ;;  %v4191_v14 = vpack.c.bf16 %v3426_v39, %v3425_v38  ;;  %v3484_v31 = vld [vmem:[#allocation8 + $0x1e8] sm:$0xff]  ;;  %v3435_v34 = vld [vmem:[#allocation8 + $0x60] sm:$0xff] }
 0x1ef   :  { %v3467_v38 = vld [vmem:[#allocation8 + $0x160] sm:$0xff]  ;;  %v3468_v39 = vld [vmem:[#allocation8 + $0x168] sm:$0xff] }
 0x1f1   :  { %3106 = vmatpush1.bf16.msra.mxu0 %v4929_v42  ;;  %3393 = vmatpush1.bf16.msra.mxu1 %v4932_v43  ;;  %v3457_v42 = vld [vmem:[#allocation8 + $0x110] sm:$0xff]  ;;  %v3458_v43 = vld [vmem:[#allocation8 + $0x118] sm:$0xff] }
 0x1f2   :  { %3107 = vmatprep.subr.bf16.mxu0 %v4937_v44  ;;  %3394 = vmatprep.subr.bf16.mxu1 %v4940_v45  ;;  %v3443_v44 = vld [vmem:[#allocation8 + $0xa0] sm:$0xff]  ;;  %v3444_v45 = vld [vmem:[#allocation8 + $0xa8] sm:$0xff] }
 0x1f5   :  { %3108 = vmatpush1.bf16.msra.mxu0 %v4935_v46  ;;  %3395 = vmatpush1.bf16.msra.mxu1 %v4938_v47  ;;  %v3475_v46 = vld [vmem:[#allocation8 + $0x1a0] sm:$0xff]  ;;  %v3476_v47 = vld [vmem:[#allocation8 + $0x1a8] sm:$0xff] }
 0x1f6   :  { %3109 = vmatprep.subr.bf16.mxu0 %v4943_v48  ;;  %3396 = vmatprep.subr.bf16.mxu1 %v4946_v49  ;;  %v4223_v48 = vpack.c.bf16 %v3458_v43, %v3457_v42  ;;  %v3427_v49 = vld [vmem:[#allocation8 + $0x20] sm:$0xff]  ;;  %v3453_v42 = vld [vmem:[#allocation8 + $0xf0] sm:$0xff]  ;;  %v3454_v43 = vld [vmem:[#allocation8 + $0xf8] sm:$0xff] }
 0x1f9   :  { %3110 = vmatpush1.bf16.msra.mxu0 %v4941_v50  ;;  %3397 = vmatpush1.bf16.msra.mxu1 %v4944_v51  ;;  %v3428_v50 = vld [vmem:[#allocation8 + $0x28] sm:$0xff]  ;;  %v4193_v51 = vpack.c.bf16 %v3444_v45, %v3443_v44  ;;  %v3485_v44 = vld [vmem:[#allocation8 + $0x1f0] sm:$0xff]  ;;  %v4213_v45 = vpack.c.bf16 %v3454_v43, %v3453_v42 }
 0x1fa   :  { %3111 = vmatprep.subr.bf16.mxu0 %v4949_v52  ;;  %3398 = vmatprep.subr.bf16.mxu1 %v4952_v53  ;;  %v4225_v52 = vpack.c.bf16 %v3476_v47, %v3475_v46  ;;  %v3459_v53 = vld [vmem:[#allocation8 + $0x120] sm:$0xff]  ;;  %v3486_v46 = vld [vmem:[#allocation8 + $0x1f8] sm:$0xff]  ;;  %v3437_v47 = vld [vmem:[#allocation8 + $0x70] sm:$0xff] }
 0x1fd   :  { %3112 = vmatpush1.bf16.msra.mxu0 %v4947_v54  ;;  %3399 = vmatpush1.bf16.msra.mxu1 %v4950_v55  ;;  %v3460_v54 = vld [vmem:[#allocation8 + $0x128] sm:$0xff]  ;;  %v3445_v55 = vld [vmem:[#allocation8 + $0xb0] sm:$0xff] }
 0x1fe   :  { %3113 = vmatprep.subr.bf16.mxu0 %v4955_v56  ;;  %3400 = vmatprep.subr.bf16.mxu1 %v4958_v57  ;;  %v3446_v56 = vld [vmem:[#allocation8 + $0xb8] sm:$0xff]  ;;  %v3477_v57 = vld [vmem:[#allocation8 + $0x1b0] sm:$0xff] }
 0x201   :  { %3114 = vmatpush1.bf16.msra.mxu0 %v4953_v58  ;;  %3401 = vmatpush1.bf16.msra.mxu1 %v4956_v59  ;;  %v3478_v58 = vld [vmem:[#allocation8 + $0x1b8] sm:$0xff]  ;;  %v4195_v59 = vpack.c.bf16 %v3428_v50, %v3427_v49  ;;  %v3469_v50 = vld [vmem:[#allocation8 + $0x170] sm:$0xff] }
 0x202   :  { %3115 = vmatprep.subr.bf16.mxu0 %v4961_v60  ;;  %3402 = vmatprep.subr.bf16.mxu1 %v4964_v61  ;;  %v4227_v60 = vpack.c.bf16 %v3460_v54, %v3459_v53  ;;  %v3429_v61 = vld [vmem:[#allocation8 + $0x30] sm:$0xff]  ;;  %v540_v53 = vlaneseq }
 0x204   :  { %v541_v54 = vshrl.u32 %v540_v53, 7 }
 0x205   :  { %3116 = vmatpush1.bf16.msra.mxu0 %v4959_v62  ;;  %3403 = vmatpush1.bf16.msra.mxu1 %v4962_v63  ;;  %v3430_v62 = vld [vmem:[#allocation8 + $0x38] sm:$0xff]  ;;  %v4197_v63 = vpack.c.bf16 %v3446_v56, %v3445_v55 }
 0x206   :  { %3117 = vmatprep.subr.bf16.mxu0 %v4967_v0  ;;  %3404 = vmatprep.subr.bf16.mxu1 %v4970_v1  ;;  %v4229_v0 = vpack.c.bf16 %v3478_v58, %v3477_v57  ;;  %v3461_v1 = vld [vmem:[#allocation8 + $0x130] sm:$0xff]  ;;  %v546_v55 = vsub.s32 1, %v541_v54  ;;  %v554_v56 = vsub.s32 3, %v541_v54  ;;  %v538_v57 = vld [vmem:[#allocation7] sm:$0xf]  ;;  %v542_v58 = vsub.s32 0, %v541_v54 }
 0x209   :  { %3118 = vmatpush1.bf16.msra.mxu0 %v4965_v2  ;;  %3405 = vmatpush1.bf16.msra.mxu1 %v4968_v3  ;;  %v3462_v2 = vld [vmem:[#allocation8 + $0x138] sm:$0xff]  ;;  %v3447_v3 = vld [vmem:[#allocation8 + $0xc0] sm:$0xff] }
 0x20a   :  { %3119 = vmatprep.subr.bf16.mxu0 %v4973_v4  ;;  %3406 = vmatprep.subr.bf16.mxu1 %v4976_v5  ;;  %v3448_v4 = vld [vmem:[#allocation8 + $0xc8] sm:$0xff]  ;;  %v3479_v5 = vld [vmem:[#allocation8 + $0x1c0] sm:$0xff] }
 0x20d   :  { %3120 = vmatpush1.bf16.msra.mxu0 %v4971_v6  ;;  %3407 = vmatpush1.bf16.msra.mxu1 %v4974_v7  ;;  %v3480_v6 = vld [vmem:[#allocation8 + $0x1c8] sm:$0xff]  ;;  %v4199_v7 = vpack.c.bf16 %v3430_v62, %v3429_v61  ;;  %v555_v61 = vrot.slane %v538_v57, %v554_v56  ;;  %v543_v62 = vrot.slane %v538_v57, %v542_v58 }
 0x20e   :  { %3121 = vmatprep.subr.bf16.mxu0 %v4979_v8  ;;  %3408 = vmatprep.subr.bf16.mxu1 %v4982_v9  ;;  %v4231_v8 = vpack.c.bf16 %v3462_v2, %v3461_v1  ;;  %v3431_v9 = vld [vmem:[#allocation8 + $0x40] sm:$0xff] }
 0x211   :  { %3122 = vmatpush1.bf16.msra.mxu0 %v4977_v10  ;;  %3409 = vmatpush1.bf16.msra.mxu1 %v4980_v12  ;;  %v3432_v10 = vld [vmem:[#allocation8 + $0x48] sm:$0xff]  ;;  %v4201_v12 = vpack.c.bf16 %v3448_v4, %v3447_v3 }
 0x212   :  { %3123 = vmatprep.subr.bf16.mxu0 %v4985_v13  ;;  %3410 = vmatprep.subr.bf16.mxu1 %v4988_v15  ;;  %v4233_v13 = vpack.c.bf16 %v3480_v6, %v3479_v5  ;;  %v3463_v15 = vld [vmem:[#allocation8 + $0x140] sm:$0xff]  ;;  %v4203_v22 = vpack.c.bf16 %v3432_v10, %v3431_v9 }
 0x215   :  { %3124 = vmatpush1.bf16.msra.mxu0 %v4983_v16  ;;  %3411 = vmatpush1.bf16.msra.mxu1 %v4986_v18  ;;  %v3464_v16 = vld [vmem:[#allocation8 + $0x148] sm:$0xff]  ;;  %v3449_v18 = vld [vmem:[#allocation8 + $0xd0] sm:$0xff] }
 0x216   :  { %3125 = vmatprep.subr.bf16.mxu0 %v4991_v19  ;;  %3412 = vmatprep.subr.bf16.mxu1 %v4994_v11  ;;  %v3450_v19 = vld [vmem:[#allocation8 + $0xd8] sm:$0xff]  ;;  %v3481_v11 = vld [vmem:[#allocation8 + $0x1d0] sm:$0xff]  ;;  %v4235_v23 = vpack.c.bf16 %v3464_v16, %v3463_v15  ;;  %v4114_v16 = vld [vmem:[#allocation10] ss:$0 sm:$0xff] }
 0x217   :  { %v4237_v26 = vpack.c.bf16 %v3482_v21, %v3481_v11 }
 0x219   :  { %3126 = vmatpush1.bf16.msra.mxu0 %v4989_v25  ;;  %3413 = vmatpush1.bf16.msra.mxu1 %v4992_v17  ;;  %v3434_v25 = vld [vmem:[#allocation8 + $0x58] sm:$0xff]  ;;  %v4205_v17 = vpack.c.bf16 %v3450_v19, %v3449_v18 }
 0x21a   :  { %4186 = vmatprep.subr.bf16.mxu0 %v4185_v28  ;;  %4218 = vmatprep.subr.bf16.mxu1 %v4217_v20  ;;  %v3466_v28 = vld [vmem:[#allocation8 + $0x158] sm:$0xff]  ;;  %v3451_v20 = vld [vmem:[#allocation8 + $0xe0] sm:$0xff]  ;;  %v4207_v32 = vpack.c.bf16 %v3434_v25, %v3433_v24 }
 0x21b   :  { %v4239_v33 = vpack.c.bf16 %v3466_v28, %v3465_v27 }
 0x21c   :  { %3128 = vmatmul.mubr.bf16.vlgmr.msra.gmra.mrb[0].mxu0 %v3664_v35  ;;  %3415 = vmatmul.mubr.bf16.vlgmr.msra.gmra.mrb[0].mxu1 %v3664_v35  ;;  %v4209_v35 = vpack.c.bf16 %v3452_v29, %v3451_v20 }
 0x21d   :  { %4188 = vmatpush3.bf16.msra.mxu0 %v4187_v36  ;;  %4220 = vmatpush3.bf16.msra.mxu1 %v4219_v37  ;;  %v4241_v36 = vpack.c.bf16 %v3484_v31, %v3483_v30  ;;  %v3436_v37 = vld [vmem:[#allocation8 + $0x68] sm:$0xff] }
 0x21e   :  { %4190 = vmatprep.subr.bf16.mxu0 %v4189_v40  ;;  %4222 = vmatprep.subr.bf16.mxu1 %v4221_v41  ;;  %v4211_v40 = vpack.c.bf16 %v3436_v37, %v3435_v34  ;;  %v4243_v41 = vpack.c.bf16 %v3468_v39, %v3467_v38 }
 0x221   :  { %4192 = vmatpush3.bf16.msra.mxu0 %v4191_v14  ;;  %4224 = vmatpush3.bf16.msra.mxu1 %v4223_v48  ;;  %v3438_v14 = vld [vmem:[#allocation8 + $0x78] sm:$0xff]  ;;  %v4245_v48 = vpack.c.bf16 %v3486_v46, %v3485_v44 }
 0x222   :  { %4194 = vmatprep.subr.bf16.mxu0 %v4193_v51  ;;  %4226 = vmatprep.subr.bf16.mxu1 %v4225_v52  ;;  %v4215_v49 = vpack.c.bf16 %v3438_v14, %v3437_v47  ;;  %v3470_v51 = vld [vmem:[#allocation8 + $0x178] sm:$0xff] }
 0x223   :  { %v4247_v52 = vpack.c.bf16 %v3470_v51, %v3469_v50 }
 0x225   :  { %4196 = vmatpush3.bf16.msra.mxu0 %v4195_v59  ;;  %4228 = vmatpush3.bf16.msra.mxu1 %v4227_v60  ;;  %v550_v59 = vsub.s32 2, %v541_v54  ;;  %v547_v60 = vrot.slane %v538_v57, %v546_v55 }
 0x226   :  { %4198 = vmatprep.subr.bf16.mxu0 %v4197_v63  ;;  %4230 = vmatprep.subr.bf16.mxu1 %v4229_v0 }
 0x227   :  { %v551_v63 = vrot.slane %v538_v57, %v550_v59 }
 0x229   :  { %4200 = vmatpush3.bf16.msra.mxu0 %v4199_v7  ;;  %4232 = vmatpush3.bf16.msra.mxu1 %v4231_v8 }
 0x22a   :  { %4202 = vmatprep.subr.bf16.mxu0 %v4201_v12  ;;  %4234 = vmatprep.subr.bf16.mxu1 %v4233_v13 }
 0x22d   :  { %4204 = vmatpush3.bf16.msra.mxu0 %v4203_v22  ;;  %4236 = vmatpush3.bf16.msra.mxu1 %v4235_v23 }
 0x22e   :  { %4206 = vmatprep.subr.bf16.mxu0 %v4205_v17  ;;  %4238 = vmatprep.subr.bf16.mxu1 %v4237_v26 }
 0x231   :  { %4208 = vmatpush3.bf16.msra.mxu0 %v4207_v32  ;;  %4240 = vmatpush3.bf16.msra.mxu1 %v4239_v33 }
 0x232   :  { %4210 = vmatprep.subr.bf16.mxu0 %v4209_v35  ;;  %4242 = vmatprep.subr.bf16.mxu1 %v4241_v36 }
 0x235   :  { %4212 = vmatpush3.bf16.msra.mxu0 %v4211_v40  ;;  %4244 = vmatpush3.bf16.msra.mxu1 %v4243_v41 }
 0x236   :  { %4214 = vmatprep.subr.bf16.mxu0 %v4213_v45  ;;  %4246 = vmatprep.subr.bf16.mxu1 %v4245_v48 }
 0x239   :  { %4216 = vmatpush3.bf16.msra.mxu0 %v4215_v49  ;;  %4248 = vmatpush3.bf16.msra.mxu1 %v4247_v52 }
 0x2ef   :  { %v3129_v0 = vpop.f32.mrb[0].mxu0  ;;  %v3416_v1 = vpop.f32.mrb[0].mxu1 }
 0x2f0   :  { %v3131_v2 = vpop.f32.mrb[1].mxu0  ;;  %v3418_v3 = vpop.f32.mrb[1].mxu1  ;;  %v4249_v8 = vadd.f32 %v3129_v0, %v543_v62  ;;  %v4251_v9 = vadd.f32 %v3416_v1, %v551_v63 }
 0x2f1   :  { %v4250_v4 = vadd.f32 %v3131_v2, %v547_v60  ;;  %v4252_v5 = vadd.f32 %v3418_v3, %v555_v61  ;;  %v3133_v6 = vpop.f32.mrb[2].mxu0  ;;  %v3420_v7 = vpop.f32.mrb[2].mxu1 }
 0x2f2   :  { %v3134_v10 = vpop.f32.mrb[3].mxu0  ;;  %v3421_v12 = vpop.f32.mrb[3].mxu1 }
 0x2f3   :  { %3558 = vmatprep.mubr.f32.mxu0 %v4250_v4  ;;  %3628 = vmatprep.mubr.f32.mxu1 %v4252_v5 }
 0x2f4   :  { %3559 = vmatmul.mubr.f32.vlgmr.msra.gmra.mrb[4].mxu0 %v4249_v8  ;;  %3629 = vmatmul.mubr.f32.vlgmr.msra.gmra.mrb[4].mxu1 %v4251_v9 }
 0x3c7   :  { %v4147_v13 = vpop.f32.mrb[4].mxu0  ;;  %v4182_v15 = vpop.f32.mrb[4].mxu1 }
 0x3c8   :  { %v4148_v18 = vpop.f32.mrb[5].mxu0  ;;  %v4183_v19 = vpop.f32.mrb[5].mxu1 }
 0x3c9   :  { %v4149_v11 = vadd.f32 %v4148_v18, %v4147_v13  ;;  %v4184_v21 = vadd.f32 %v4183_v19, %v4182_v15 }
 0x3cb   :  { %v3561_v22 = vadd.f32 %v4149_v11, %v4114_v16 }
 0x3cd   :  { %v3631_v23 = vadd.f32 %v4184_v21, %v3561_v22 }
 0x3cf   :  { %3634 = vst [vmem:[#allocation11] sm:$0xff] %v3631_v23 }
 0x3d0   :  { %5118 = shalt.err (!%p5115_p2)
}
 0x3d1   :  { %s5119_s6 = scalar_lea.hbm %s5290_s5, 128 }
 0x3d2   :  { %p5120_p3 = scmp.ne.s32.totalorder %s5290_s5, %s5119_s6  ;;  %p5123_p4 = scmp.lt.u32.totalorder %s5119_s6, %s5290_s5 }
 0x3d4   :  { %p5125_p5 = pnand %p5123_p4, %p5120_p3 }
 0x3d6   :  { %5128 = shalt.err (!%p5125_p5)
}
 0x3d7   :  { %3644 = dma.vmem_to_hbm [thread:$0]  %s3642_s28, 128, %s5290_s5, [#allocation4]  }
 0x3d8   :  { %5135 = dma.done.wait [#allocation4], 128  }
 0x3d9   :  { %5136 = vsyncadd [#allocation4], 4294967168 }
 0x3da   :  { %3648 = vsyncpa [#allocation3], 1 }
 0x3db   :  { %3649 = vsyncpa [#allocation6], 1 }
 0x3dc   :  { %3650 = vsyncpa [#allocation9], 1 }
 0x3dd   :  { %3651 = vsyncpa [#allocation4], 1 }

</bundles_post_ra>
